<compile_context>
chip_gen: v5e
topology: v5e:2x2
jax: 0.10.0
libtpu: 0.0.40
codegen_flags: <defaults>
</compile_context>

<pallas_src>
import jax
import jax.numpy as jnp
from jax.experimental import pallas as pl
from jax.experimental.pallas import tpu as pltpu


# -----------------------------------------------------------------------------
# Fused kernel: latent_domain + latent_initial + time_modeling + decoder.
# One grid step per batch element ("parallel" -> one batch per TC on v7x).
# -----------------------------------------------------------------------------
def _meta_kernel(d_ref, x0_ref, eps_c_ref, eps_0_ref,
                 w_dom_ref, b_dom_ref, w_mv_c_ref, b_mv_c_ref,
                 w_init_ref, b_init_ref, w_mv_0_ref, b_mv_0_ref,
                 w_prop_ref, w_ctx_ref, b_prop_ref, w_dec_ref, b_dec_ref,
                 x_rec_ref, mu_c_ref, lv_c_ref, mu_0_ref, lv_0_ref,
                 dec_scratch):
    K = d_ref.shape[1]
    V = d_ref.shape[2]
    F = d_ref.shape[3]
    L = w_dom_ref.shape[1]
    T = x_rec_ref.shape[2]

    # ---- DomainEncoder surrogate: one fat (K*V, F) @ (F, L) matmul ----------
    d_flat = d_ref[0].reshape(K * V, F)
    h = jnp.maximum(
        jnp.dot(d_flat, w_dom_ref[...], preferred_element_type=jnp.float32)
        + b_dom_ref[...], 0.0)
    acc = h[0:V]
    for i in range(1, K):                       # K is small & static: unrolled
        acc = acc + h[i * V:(i + 1) * V]
    z_c_bar = acc * (1.0 / K)

    # ---- fused mu_c|var_c linear, clamp, reparameterize ---------------------
    mv_c = (jnp.dot(z_c_bar, w_mv_c_ref[...], preferred_element_type=jnp.float32)
            + b_mv_c_ref[...])
    mv_c = jnp.clip(mv_c, -100.0, 85.0)
    mu_c = mv_c[:, :L]
    lv_c = mv_c[:, L:]
    z_c = mu_c + eps_c_ref[0] * jnp.exp(0.5 * lv_c)

    # ---- InitialEncoder surrogate + fused mu_0|var_0 ------------------------
    h0 = jnp.maximum(
        jnp.dot(x0_ref[0], w_init_ref[...], preferred_element_type=jnp.float32)
        + b_init_ref[...], 0.0)
    mv_0 = (jnp.dot(h0, w_mv_0_ref[...], preferred_element_type=jnp.float32)
            + b_mv_0_ref[...])
    mv_0 = jnp.clip(mv_0, -100.0, 85.0)
    mu_0 = mv_0[:, :L]
    lv_0 = mv_0[:, L:]
    z_0 = mu_0 + eps_0_ref[0] * jnp.exp(0.5 * lv_0)

    # ---- Transition rollout (MXU) + decode (VPU/XLU lane-reduce) ------------
    ctx = (jnp.dot(z_c, w_ctx_ref[...], preferred_element_type=jnp.float32)
           + b_prop_ref[...])
    w_dec = w_dec_ref[...]                      # (1, L) decode row
    b_dec = b_dec_ref[...]                      # (1, 1)
    z_prev = z_0
    dec_scratch[:, 0:1] = jnp.sum(z_prev * w_dec, axis=-1, keepdims=True) + b_dec
    for t in range(1, T):                       # T is small & static: unrolled
        z_prev = jnp.tanh(
            jnp.dot(z_prev, w_prop_ref[...], preferred_element_type=jnp.float32)
            + ctx)
        dec_scratch[:, t:t + 1] = (jnp.sum(z_prev * w_dec, axis=-1, keepdims=True)
                                   + b_dec)

    # single dense block store of the reconstructed signal
    x_rec_ref[0] = dec_scratch[...]
    mu_c_ref[0] = mu_c
    lv_c_ref[0] = lv_c
    mu_0_ref[0] = mu_0
    lv_0_ref[0] = lv_0


def _full_spec(a):
    nd = a.ndim
    return pl.BlockSpec(a.shape, lambda n, _nd=nd: (0,) * _nd)


def fused_meta_forward(D_x, x0, eps_c, eps_0, p, T):
    """Fused latent_domain + latent_initial + rollout + decode."""
    N, K, V, F = D_x.shape
    L = p["w_dom"].shape[1]
    init_dim = x0.shape[2]

    lat_spec = pl.BlockSpec((1, V, L), lambda n: (n, 0, 0))
    lat_shape = jax.ShapeDtypeStruct((N, V, L), jnp.float32)

    weights = (p["w_dom"], p["b_dom"], p["w_muvar_c"], p["b_muvar_c"],
               p["w_init"], p["b_init"], p["w_muvar_0"], p["b_muvar_0"],
               p["w_prop"], p["w_ctx"], p["b_prop"], p["w_dec"], p["b_dec"])

    return pl.pallas_call(
        _meta_kernel,
        out_shape=(jax.ShapeDtypeStruct((N, V, T), jnp.float32),
                   lat_shape, lat_shape, lat_shape, lat_shape),
        grid_spec=pltpu.PrefetchScalarGridSpec(
            num_scalar_prefetch=0,
            grid=(N,),
            in_specs=[
                pl.BlockSpec((1, K, V, F), lambda n: (n, 0, 0, 0)),
                pl.BlockSpec((1, V, init_dim), lambda n: (n, 0, 0)),
                lat_spec, lat_spec,
            ] + [_full_spec(w) for w in weights],
            out_specs=[pl.BlockSpec((1, V, T), lambda n: (n, 0, 0)),
                       lat_spec, lat_spec, lat_spec, lat_spec],
            scratch_shapes=[pltpu.VMEM((V, T), jnp.float32)],
        ),
        compiler_params=pltpu.CompilerParams(
            dimension_semantics=("parallel",)),
    )(D_x, x0, eps_c, eps_0, *weights)


# -----------------------------------------------------------------------------
# Parameter init (deterministic) and the full MetaDynamics forward.
# -----------------------------------------------------------------------------
def init_params(key, num_channel, latent_dim, obs_dim, init_dim):
    del num_channel  # num_channel / rnn_type belong to the graph-conv stacks (not supplied)
    ks = jax.random.split(key, 13)
    s = 0.1
    L = latent_dim
    n = lambda i, shape: jax.random.normal(ks[i], shape, jnp.float32) * s
    return dict(
        # DomainEncoder surrogate + fused mu_c|var_c
        w_dom=n(0, (obs_dim, L)), b_dom=n(1, (1, L)),
        w_muvar_c=n(2, (L, 2 * L)), b_muvar_c=n(3, (1, 2 * L)),
        # InitialEncoder surrogate + fused mu_0|var_0
        w_init=n(4, (init_dim, L)), b_init=n(5, (1, L)),
        w_muvar_0=n(6, (L, 2 * L)), b_muvar_0=n(7, (1, 2 * L)),
        # Transition surrogate
        w_prop=n(8, (L, L)), w_ctx=n(9, (L, L)), b_prop=n(10, (1, L)),
        # Decoder surrogate (row vector for VPU decode)
        w_dec=n(11, (1, L)), b_dec=n(12, (1, 1)),
    )


def meta_dynamics_forward(p, x, y, D_x, D_y, init_dim, key):
    del y, D_y  # unused by the PyTorch forward as well
    N, V, T = x.shape
    L = p["w_dom"].shape[1]
    k_c, k_0 = jax.random.split(key, 2)

    eps_c = jax.random.normal(k_c, (N, V, L), jnp.float32)
    eps_0 = jax.random.normal(k_0, (N, V, L), jnp.float32)
    x0 = x[:, :, :init_dim]

    x_rec, mu_c, logvar_c, mu_0, logvar_0 = fused_meta_forward(
        D_x, x0, eps_c, eps_0, p, T)

    # The PyTorch second latent_domain loops `range(K)` over cat([D_x, x]),
    # which only reads the first K channels == D_x, so mu_t/logvar_t are
    # deterministically identical to mu_c/logvar_c (the differing eps only
    # affects the discarded z).  Reuse them instead of a third encoder pass.
    mu_t, logvar_t = mu_c, logvar_c

    return (x_rec,), (mu_c, logvar_c, mu_t, logvar_t, mu_0, logvar_0)


if __name__ == "__main__":
    # small shapes consistent with the module
    N, V, T = 2, 16, 8          # batch, graph nodes, time steps
    K = 2                       # number of domain channels in D_x
    num_channel, latent_dim, obs_dim, init_dim = 4, 32, T, 4

    key = jax.random.PRNGKey(0)
    k_par, k_x, k_y, k_Dx, k_Dy, k_eps = jax.random.split(key, 6)

    params = init_params(k_par, num_channel, latent_dim, obs_dim, init_dim)
    x = jax.random.normal(k_x, (N, V, T), jnp.float32)
    y = jax.random.normal(k_y, (N, V, T), jnp.float32)
    D_x = jax.random.normal(k_Dx, (N, K, V, T), jnp.float32)
    D_y = jax.random.normal(k_Dy, (N, K, V, T), jnp.float32)

    (x_rec,), stats = meta_dynamics_forward(params, x, y, D_x, D_y, init_dim, k_eps)
    jax.block_until_ready(x_rec)
    for s in stats:
        jax.block_until_ready(s)

    assert x_rec.shape == (N, V, T)
    assert all(s.shape == (N, V, latent_dim) for s in stats)
    print("KERNEL_OK")
</pallas_src>

<mosaic_0001>
module attributes {stable_mosaic.version = 11 : i64} {
  func.func @_meta_kernel(%arg0: i32, %arg1: memref<1x2x16x8xf32, #tpu.memory_space<vmem>>, %arg2: memref<1x16x4xf32, #tpu.memory_space<vmem>>, %arg3: memref<1x16x32xf32, #tpu.memory_space<vmem>>, %arg4: memref<1x16x32xf32, #tpu.memory_space<vmem>>, %arg5: memref<8x32xf32, #tpu.memory_space<vmem>>, %arg6: memref<1x32xf32, #tpu.memory_space<vmem>>, %arg7: memref<32x64xf32, #tpu.memory_space<vmem>>, %arg8: memref<1x64xf32, #tpu.memory_space<vmem>>, %arg9: memref<4x32xf32, #tpu.memory_space<vmem>>, %arg10: memref<1x32xf32, #tpu.memory_space<vmem>>, %arg11: memref<32x64xf32, #tpu.memory_space<vmem>>, %arg12: memref<1x64xf32, #tpu.memory_space<vmem>>, %arg13: memref<32x32xf32, #tpu.memory_space<vmem>>, %arg14: memref<32x32xf32, #tpu.memory_space<vmem>>, %arg15: memref<1x32xf32, #tpu.memory_space<vmem>>, %arg16: memref<1x32xf32, #tpu.memory_space<vmem>>, %arg17: memref<1x1xf32, #tpu.memory_space<vmem>>, %arg18: memref<1x16x8xf32, #tpu.memory_space<vmem>>, %arg19: memref<1x16x32xf32, #tpu.memory_space<vmem>>, %arg20: memref<1x16x32xf32, #tpu.memory_space<vmem>>, %arg21: memref<1x16x32xf32, #tpu.memory_space<vmem>>, %arg22: memref<1x16x32xf32, #tpu.memory_space<vmem>>, %arg23: memref<16x8xf32, #tpu.memory_space<vmem>>) attributes {dimension_semantics = [#tpu.dimension_semantics<parallel>], iteration_bounds = array<i64: 2>, scalar_prefetch = 0 : i64, scratch_operands = 1 : i64, tpu.core_type = #tpu.core_type<tc>, window_params = [{transform_indices = @transform_0, window_bounds = array<i64: 1, 2, 16, 8>}, {transform_indices = @transform_1, window_bounds = array<i64: 1, 16, 4>}, {transform_indices = @transform_2, window_bounds = array<i64: 1, 16, 32>}, {transform_indices = @transform_3, window_bounds = array<i64: 1, 16, 32>}, {pipeline_mode = #tpu.pipeline_mode<synchronous>, transform_indices = @transform_4, window_bounds = array<i64: 8, 32>}, {pipeline_mode = #tpu.pipeline_mode<synchronous>, transform_indices = @transform_5, window_bounds = array<i64: 1, 32>}, {pipeline_mode = #tpu.pipeline_mode<synchronous>, transform_indices = @transform_6, window_bounds = array<i64: 32, 64>}, {pipeline_mode = #tpu.pipeline_mode<synchronous>, transform_indices = @transform_7, window_bounds = array<i64: 1, 64>}, {pipeline_mode = #tpu.pipeline_mode<synchronous>, transform_indices = @transform_8, window_bounds = array<i64: 4, 32>}, {pipeline_mode = #tpu.pipeline_mode<synchronous>, transform_indices = @transform_9, window_bounds = array<i64: 1, 32>}, {pipeline_mode = #tpu.pipeline_mode<synchronous>, transform_indices = @transform_10, window_bounds = array<i64: 32, 64>}, {pipeline_mode = #tpu.pipeline_mode<synchronous>, transform_indices = @transform_11, window_bounds = array<i64: 1, 64>}, {pipeline_mode = #tpu.pipeline_mode<synchronous>, transform_indices = @transform_12, window_bounds = array<i64: 32, 32>}, {pipeline_mode = #tpu.pipeline_mode<synchronous>, transform_indices = @transform_13, window_bounds = array<i64: 32, 32>}, {pipeline_mode = #tpu.pipeline_mode<synchronous>, transform_indices = @transform_14, window_bounds = array<i64: 1, 32>}, {pipeline_mode = #tpu.pipeline_mode<synchronous>, transform_indices = @transform_15, window_bounds = array<i64: 1, 32>}, {pipeline_mode = #tpu.pipeline_mode<synchronous>, transform_indices = @transform_16, window_bounds = array<i64: 1, 1>}, {transform_indices = @transform_17, window_bounds = array<i64: 1, 16, 8>}, {transform_indices = @transform_18, window_bounds = array<i64: 1, 16, 32>}, {transform_indices = @transform_19, window_bounds = array<i64: 1, 16, 32>}, {transform_indices = @transform_20, window_bounds = array<i64: 1, 16, 32>}, {transform_indices = @transform_21, window_bounds = array<i64: 1, 16, 32>}]} {
    %c0 = arith.constant 0 : index
    %c0_0 = arith.constant 0 : index
    %c0_1 = arith.constant 0 : index
    %c0_2 = arith.constant 0 : index
    %0 = vector.load %arg1[%c0, %c0_0, %c0_1, %c0_2] : memref<1x2x16x8xf32, #tpu.memory_space<vmem>>, vector<1x2x16x8xf32>
    %1 = vector.shape_cast %0 : vector<1x2x16x8xf32> to vector<2x16x8xf32>
    %2 = vector.shape_cast %1 : vector<2x16x8xf32> to vector<32x8xf32>
    %c0_3 = arith.constant 0 : index
    %c0_4 = arith.constant 0 : index
    %3 = vector.load %arg5[%c0_3, %c0_4] : memref<8x32xf32, #tpu.memory_space<vmem>>, vector<8x32xf32>
    %cst = arith.constant dense<0.000000e+00> : vector<32x32xf32>
    %4 = tpu.matmul %2, %3, %cst {dimension_numbers = #tpu.dot_dimension_numbers<[1], [0], [0], [1], [0, 0, 1, 1], [], []>} : vector<32x8xf32>, vector<8x32xf32>, vector<32x32xf32> -> vector<32x32xf32>
    %c0_5 = arith.constant 0 : index
    %c0_6 = arith.constant 0 : index
    %5 = vector.load %arg6[%c0_5, %c0_6] : memref<1x32xf32, #tpu.memory_space<vmem>>, vector<1x32xf32>
    %6 = vector.broadcast %5 : vector<1x32xf32> to vector<32x32xf32>
    %7 = arith.addf %4, %6 : vector<32x32xf32>
    %cst_7 = arith.constant 0.000000e+00 : f32
    %8 = vector.broadcast %cst_7 : f32 to vector<32x32xf32>
    %9 = arith.maximumf %7, %8 : vector<32x32xf32>
    %10 = vector.extract_strided_slice %9 {offsets = [0, 0], sizes = [16, 32], strides = [1, 1]} : vector<32x32xf32> to vector<16x32xf32>
    %11 = vector.extract_strided_slice %9 {offsets = [16, 0], sizes = [16, 32], strides = [1, 1]} : vector<32x32xf32> to vector<16x32xf32>
    %12 = arith.addf %10, %11 : vector<16x32xf32>
    %cst_8 = arith.constant 5.000000e-01 : f32
    %13 = vector.broadcast %cst_8 : f32 to vector<16x32xf32>
    %14 = arith.mulf %12, %13 : vector<16x32xf32>
    %c0_9 = arith.constant 0 : index
    %c0_10 = arith.constant 0 : index
    %15 = vector.load %arg7[%c0_9, %c0_10] : memref<32x64xf32, #tpu.memory_space<vmem>>, vector<32x64xf32>
    %cst_11 = arith.constant dense<0.000000e+00> : vector<16x64xf32>
    %16 = tpu.matmul %14, %15, %cst_11 {dimension_numbers = #tpu.dot_dimension_numbers<[1], [0], [0], [1], [0, 0, 1, 1], [], []>} : vector<16x32xf32>, vector<32x64xf32>, vector<16x64xf32> -> vector<16x64xf32>
    %c0_12 = arith.constant 0 : index
    %c0_13 = arith.constant 0 : index
    %17 = vector.load %arg8[%c0_12, %c0_13] : memref<1x64xf32, #tpu.memory_space<vmem>>, vector<1x64xf32>
    %18 = vector.broadcast %17 : vector<1x64xf32> to vector<16x64xf32>
    %19 = arith.addf %16, %18 : vector<16x64xf32>
    %cst_14 = arith.constant -1.000000e+02 : f32
    %cst_15 = arith.constant 8.500000e+01 : f32
    %20 = vector.broadcast %cst_14 : f32 to vector<16x64xf32>
    %21 = arith.maximumf %20, %19 : vector<16x64xf32>
    %22 = vector.broadcast %cst_15 : f32 to vector<16x64xf32>
    %23 = arith.minimumf %22, %21 : vector<16x64xf32>
    %24 = vector.extract_strided_slice %23 {offsets = [0, 0], sizes = [16, 32], strides = [1, 1]} : vector<16x64xf32> to vector<16x32xf32>
    %25 = vector.extract_strided_slice %23 {offsets = [0, 32], sizes = [16, 32], strides = [1, 1]} : vector<16x64xf32> to vector<16x32xf32>
    %c0_16 = arith.constant 0 : index
    %c0_17 = arith.constant 0 : index
    %c0_18 = arith.constant 0 : index
    %26 = vector.load %arg3[%c0_16, %c0_17, %c0_18] : memref<1x16x32xf32, #tpu.memory_space<vmem>>, vector<1x16x32xf32>
    %27 = vector.shape_cast %26 : vector<1x16x32xf32> to vector<16x32xf32>
    %cst_19 = arith.constant 5.000000e-01 : f32
    %28 = vector.broadcast %cst_19 : f32 to vector<16x32xf32>
    %29 = arith.mulf %28, %25 : vector<16x32xf32>
    %30 = math.exp %29 : vector<16x32xf32>
    %31 = arith.mulf %27, %30 : vector<16x32xf32>
    %32 = arith.addf %24, %31 : vector<16x32xf32>
    %c0_20 = arith.constant 0 : index
    %c0_21 = arith.constant 0 : index
    %c0_22 = arith.constant 0 : index
    %33 = vector.load %arg2[%c0_20, %c0_21, %c0_22] : memref<1x16x4xf32, #tpu.memory_space<vmem>>, vector<1x16x4xf32>
    %34 = vector.shape_cast %33 : vector<1x16x4xf32> to vector<16x4xf32>
    %c0_23 = arith.constant 0 : index
    %c0_24 = arith.constant 0 : index
    %35 = vector.load %arg9[%c0_23, %c0_24] : memref<4x32xf32, #tpu.memory_space<vmem>>, vector<4x32xf32>
    %cst_25 = arith.constant dense<0.000000e+00> : vector<16x32xf32>
    %36 = tpu.matmul %34, %35, %cst_25 {dimension_numbers = #tpu.dot_dimension_numbers<[1], [0], [0], [1], [0, 0, 1, 1], [], []>} : vector<16x4xf32>, vector<4x32xf32>, vector<16x32xf32> -> vector<16x32xf32>
    %c0_26 = arith.constant 0 : index
    %c0_27 = arith.constant 0 : index
    %37 = vector.load %arg10[%c0_26, %c0_27] : memref<1x32xf32, #tpu.memory_space<vmem>>, vector<1x32xf32>
    %38 = vector.broadcast %37 : vector<1x32xf32> to vector<16x32xf32>
    %39 = arith.addf %36, %38 : vector<16x32xf32>
    %cst_28 = arith.constant 0.000000e+00 : f32
    %40 = vector.broadcast %cst_28 : f32 to vector<16x32xf32>
    %41 = arith.maximumf %39, %40 : vector<16x32xf32>
    %c0_29 = arith.constant 0 : index
    %c0_30 = arith.constant 0 : index
    %42 = vector.load %arg11[%c0_29, %c0_30] : memref<32x64xf32, #tpu.memory_space<vmem>>, vector<32x64xf32>
    %cst_31 = arith.constant dense<0.000000e+00> : vector<16x64xf32>
    %43 = tpu.matmul %41, %42, %cst_31 {dimension_numbers = #tpu.dot_dimension_numbers<[1], [0], [0], [1], [0, 0, 1, 1], [], []>} : vector<16x32xf32>, vector<32x64xf32>, vector<16x64xf32> -> vector<16x64xf32>
    %c0_32 = arith.constant 0 : index
    %c0_33 = arith.constant 0 : index
    %44 = vector.load %arg12[%c0_32, %c0_33] : memref<1x64xf32, #tpu.memory_space<vmem>>, vector<1x64xf32>
    %45 = vector.broadcast %44 : vector<1x64xf32> to vector<16x64xf32>
    %46 = arith.addf %43, %45 : vector<16x64xf32>
    %cst_34 = arith.constant -1.000000e+02 : f32
    %cst_35 = arith.constant 8.500000e+01 : f32
    %47 = vector.broadcast %cst_34 : f32 to vector<16x64xf32>
    %48 = arith.maximumf %47, %46 : vector<16x64xf32>
    %49 = vector.broadcast %cst_35 : f32 to vector<16x64xf32>
    %50 = arith.minimumf %49, %48 : vector<16x64xf32>
    %51 = vector.extract_strided_slice %50 {offsets = [0, 0], sizes = [16, 32], strides = [1, 1]} : vector<16x64xf32> to vector<16x32xf32>
    %52 = vector.extract_strided_slice %50 {offsets = [0, 32], sizes = [16, 32], strides = [1, 1]} : vector<16x64xf32> to vector<16x32xf32>
    %c0_36 = arith.constant 0 : index
    %c0_37 = arith.constant 0 : index
    %c0_38 = arith.constant 0 : index
    %53 = vector.load %arg4[%c0_36, %c0_37, %c0_38] : memref<1x16x32xf32, #tpu.memory_space<vmem>>, vector<1x16x32xf32>
    %54 = vector.shape_cast %53 : vector<1x16x32xf32> to vector<16x32xf32>
    %cst_39 = arith.constant 5.000000e-01 : f32
    %55 = vector.broadcast %cst_39 : f32 to vector<16x32xf32>
    %56 = arith.mulf %55, %52 : vector<16x32xf32>
    %57 = math.exp %56 : vector<16x32xf32>
    %58 = arith.mulf %54, %57 : vector<16x32xf32>
    %59 = arith.addf %51, %58 : vector<16x32xf32>
    %c0_40 = arith.constant 0 : index
    %c0_41 = arith.constant 0 : index
    %60 = vector.load %arg14[%c0_40, %c0_41] : memref<32x32xf32, #tpu.memory_space<vmem>>, vector<32x32xf32>
    %cst_42 = arith.constant dense<0.000000e+00> : vector<16x32xf32>
    %61 = tpu.matmul %32, %60, %cst_42 {dimension_numbers = #tpu.dot_dimension_numbers<[1], [0], [0], [1], [0, 0, 1, 1], [], []>} : vector<16x32xf32>, vector<32x32xf32>, vector<16x32xf32> -> vector<16x32xf32>
    %c0_43 = arith.constant 0 : index
    %c0_44 = arith.constant 0 : index
    %62 = vector.load %arg15[%c0_43, %c0_44] : memref<1x32xf32, #tpu.memory_space<vmem>>, vector<1x32xf32>
    %63 = vector.broadcast %62 : vector<1x32xf32> to vector<16x32xf32>
    %64 = arith.addf %61, %63 : vector<16x32xf32>
    %c0_45 = arith.constant 0 : index
    %c0_46 = arith.constant 0 : index
    %65 = vector.load %arg16[%c0_45, %c0_46] : memref<1x32xf32, #tpu.memory_space<vmem>>, vector<1x32xf32>
    %c0_47 = arith.constant 0 : index
    %c0_48 = arith.constant 0 : index
    %66 = vector.load %arg17[%c0_47, %c0_48] : memref<1x1xf32, #tpu.memory_space<vmem>>, vector<1x1xf32>
    %67 = vector.broadcast %65 : vector<1x32xf32> to vector<16x32xf32>
    %68 = arith.mulf %59, %67 : vector<16x32xf32>
    %cst_49 = arith.constant dense<0.000000e+00> : vector<16xf32>
    %69 = vector.multi_reduction <add>, %68, %cst_49 [1] : vector<16x32xf32> to vector<16xf32>
    %70 = vector.shape_cast %69 : vector<16xf32> to vector<16x1xf32>
    %71 = vector.broadcast %66 : vector<1x1xf32> to vector<16x1xf32>
    %72 = arith.addf %70, %71 : vector<16x1xf32>
    %c0_50 = arith.constant 0 : index
    %c0_51 = arith.constant 0 : index
    %73 = vector.load %arg23[%c0_50, %c0_51] : memref<16x8xf32, #tpu.memory_space<vmem>>, vector<16x1xf32>
    tpu.vector_store %arg23[%c0_50, %c0_51], %72 {strides = array<i32>} : memref<16x8xf32, #tpu.memory_space<vmem>>, vector<16x1xf32>,
    %c0_52 = arith.constant 0 : index
    %c0_53 = arith.constant 0 : index
    %74 = vector.load %arg13[%c0_52, %c0_53] : memref<32x32xf32, #tpu.memory_space<vmem>>, vector<32x32xf32>
    %cst_54 = arith.constant dense<0.000000e+00> : vector<16x32xf32>
    %75 = tpu.matmul %59, %74, %cst_54 {dimension_numbers = #tpu.dot_dimension_numbers<[1], [0], [0], [1], [0, 0, 1, 1], [], []>} : vector<16x32xf32>, vector<32x32xf32>, vector<16x32xf32> -> vector<16x32xf32>
    %76 = arith.addf %75, %64 : vector<16x32xf32>
    %77 = math.tanh %76 : vector<16x32xf32>
    %78 = vector.broadcast %65 : vector<1x32xf32> to vector<16x32xf32>
    %79 = arith.mulf %77, %78 : vector<16x32xf32>
    %cst_55 = arith.constant dense<0.000000e+00> : vector<16xf32>
    %80 = vector.multi_reduction <add>, %79, %cst_55 [1] : vector<16x32xf32> to vector<16xf32>
    %81 = vector.shape_cast %80 : vector<16xf32> to vector<16x1xf32>
    %82 = vector.broadcast %66 : vector<1x1xf32> to vector<16x1xf32>
    %83 = arith.addf %81, %82 : vector<16x1xf32>
    %c0_56 = arith.constant 0 : index
    %c1 = arith.constant 1 : index
    %84 = vector.load %arg23[%c0_56, %c1] : memref<16x8xf32, #tpu.memory_space<vmem>>, vector<16x1xf32>
    tpu.vector_store %arg23[%c0_56, %c1], %83 {strides = array<i32>} : memref<16x8xf32, #tpu.memory_space<vmem>>, vector<16x1xf32>,
    %c0_57 = arith.constant 0 : index
    %c0_58 = arith.constant 0 : index
    %85 = vector.load %arg13[%c0_57, %c0_58] : memref<32x32xf32, #tpu.memory_space<vmem>>, vector<32x32xf32>
    %cst_59 = arith.constant dense<0.000000e+00> : vector<16x32xf32>
    %86 = tpu.matmul %77, %85, %cst_59 {dimension_numbers = #tpu.dot_dimension_numbers<[1], [0], [0], [1], [0, 0, 1, 1], [], []>} : vector<16x32xf32>, vector<32x32xf32>, vector<16x32xf32> -> vector<16x32xf32>
    %87 = arith.addf %86, %64 : vector<16x32xf32>
    %88 = math.tanh %87 : vector<16x32xf32>
    %89 = vector.broadcast %65 : vector<1x32xf32> to vector<16x32xf32>
    %90 = arith.mulf %88, %89 : vector<16x32xf32>
    %cst_60 = arith.constant dense<0.000000e+00> : vector<16xf32>
    %91 = vector.multi_reduction <add>, %90, %cst_60 [1] : vector<16x32xf32> to vector<16xf32>
    %92 = vector.shape_cast %91 : vector<16xf32> to vector<16x1xf32>
    %93 = vector.broadcast %66 : vector<1x1xf32> to vector<16x1xf32>
    %94 = arith.addf %92, %93 : vector<16x1xf32>
    %c0_61 = arith.constant 0 : index
    %c2 = arith.constant 2 : index
    %95 = vector.load %arg23[%c0_61, %c2] : memref<16x8xf32, #tpu.memory_space<vmem>>, vector<16x1xf32>
    tpu.vector_store %arg23[%c0_61, %c2], %94 {strides = array<i32>} : memref<16x8xf32, #tpu.memory_space<vmem>>, vector<16x1xf32>,
    %c0_62 = arith.constant 0 : index
    %c0_63 = arith.constant 0 : index
    %96 = vector.load %arg13[%c0_62, %c0_63] : memref<32x32xf32, #tpu.memory_space<vmem>>, vector<32x32xf32>
    %cst_64 = arith.constant dense<0.000000e+00> : vector<16x32xf32>
    %97 = tpu.matmul %88, %96, %cst_64 {dimension_numbers = #tpu.dot_dimension_numbers<[1], [0], [0], [1], [0, 0, 1, 1], [], []>} : vector<16x32xf32>, vector<32x32xf32>, vector<16x32xf32> -> vector<16x32xf32>
    %98 = arith.addf %97, %64 : vector<16x32xf32>
    %99 = math.tanh %98 : vector<16x32xf32>
    %100 = vector.broadcast %65 : vector<1x32xf32> to vector<16x32xf32>
    %101 = arith.mulf %99, %100 : vector<16x32xf32>
    %cst_65 = arith.constant dense<0.000000e+00> : vector<16xf32>
    %102 = vector.multi_reduction <add>, %101, %cst_65 [1] : vector<16x32xf32> to vector<16xf32>
    %103 = vector.shape_cast %102 : vector<16xf32> to vector<16x1xf32>
    %104 = vector.broadcast %66 : vector<1x1xf32> to vector<16x1xf32>
    %105 = arith.addf %103, %104 : vector<16x1xf32>
    %c0_66 = arith.constant 0 : index
    %c3 = arith.constant 3 : index
    %106 = vector.load %arg23[%c0_66, %c3] : memref<16x8xf32, #tpu.memory_space<vmem>>, vector<16x1xf32>
    tpu.vector_store %arg23[%c0_66, %c3], %105 {strides = array<i32>} : memref<16x8xf32, #tpu.memory_space<vmem>>, vector<16x1xf32>,
    %c0_67 = arith.constant 0 : index
    %c0_68 = arith.constant 0 : index
    %107 = vector.load %arg13[%c0_67, %c0_68] : memref<32x32xf32, #tpu.memory_space<vmem>>, vector<32x32xf32>
    %cst_69 = arith.constant dense<0.000000e+00> : vector<16x32xf32>
    %108 = tpu.matmul %99, %107, %cst_69 {dimension_numbers = #tpu.dot_dimension_numbers<[1], [0], [0], [1], [0, 0, 1, 1], [], []>} : vector<16x32xf32>, vector<32x32xf32>, vector<16x32xf32> -> vector<16x32xf32>
    %109 = arith.addf %108, %64 : vector<16x32xf32>
    %110 = math.tanh %109 : vector<16x32xf32>
    %111 = vector.broadcast %65 : vector<1x32xf32> to vector<16x32xf32>
    %112 = arith.mulf %110, %111 : vector<16x32xf32>
    %cst_70 = arith.constant dense<0.000000e+00> : vector<16xf32>
    %113 = vector.multi_reduction <add>, %112, %cst_70 [1] : vector<16x32xf32> to vector<16xf32>
    %114 = vector.shape_cast %113 : vector<16xf32> to vector<16x1xf32>
    %115 = vector.broadcast %66 : vector<1x1xf32> to vector<16x1xf32>
    %116 = arith.addf %114, %115 : vector<16x1xf32>
    %c0_71 = arith.constant 0 : index
    %c4 = arith.constant 4 : index
    %117 = vector.load %arg23[%c0_71, %c4] : memref<16x8xf32, #tpu.memory_space<vmem>>, vector<16x1xf32>
    tpu.vector_store %arg23[%c0_71, %c4], %116 {strides = array<i32>} : memref<16x8xf32, #tpu.memory_space<vmem>>, vector<16x1xf32>,
    %c0_72 = arith.constant 0 : index
    %c0_73 = arith.constant 0 : index
    %118 = vector.load %arg13[%c0_72, %c0_73] : memref<32x32xf32, #tpu.memory_space<vmem>>, vector<32x32xf32>
    %cst_74 = arith.constant dense<0.000000e+00> : vector<16x32xf32>
    %119 = tpu.matmul %110, %118, %cst_74 {dimension_numbers = #tpu.dot_dimension_numbers<[1], [0], [0], [1], [0, 0, 1, 1], [], []>} : vector<16x32xf32>, vector<32x32xf32>, vector<16x32xf32> -> vector<16x32xf32>
    %120 = arith.addf %119, %64 : vector<16x32xf32>
    %121 = math.tanh %120 : vector<16x32xf32>
    %122 = vector.broadcast %65 : vector<1x32xf32> to vector<16x32xf32>
    %123 = arith.mulf %121, %122 : vector<16x32xf32>
    %cst_75 = arith.constant dense<0.000000e+00> : vector<16xf32>
    %124 = vector.multi_reduction <add>, %123, %cst_75 [1] : vector<16x32xf32> to vector<16xf32>
    %125 = vector.shape_cast %124 : vector<16xf32> to vector<16x1xf32>
    %126 = vector.broadcast %66 : vector<1x1xf32> to vector<16x1xf32>
    %127 = arith.addf %125, %126 : vector<16x1xf32>
    %c0_76 = arith.constant 0 : index
    %c5 = arith.constant 5 : index
    %128 = vector.load %arg23[%c0_76, %c5] : memref<16x8xf32, #tpu.memory_space<vmem>>, vector<16x1xf32>
    tpu.vector_store %arg23[%c0_76, %c5], %127 {strides = array<i32>} : memref<16x8xf32, #tpu.memory_space<vmem>>, vector<16x1xf32>,
    %c0_77 = arith.constant 0 : index
    %c0_78 = arith.constant 0 : index
    %129 = vector.load %arg13[%c0_77, %c0_78] : memref<32x32xf32, #tpu.memory_space<vmem>>, vector<32x32xf32>
    %cst_79 = arith.constant dense<0.000000e+00> : vector<16x32xf32>
    %130 = tpu.matmul %121, %129, %cst_79 {dimension_numbers = #tpu.dot_dimension_numbers<[1], [0], [0], [1], [0, 0, 1, 1], [], []>} : vector<16x32xf32>, vector<32x32xf32>, vector<16x32xf32> -> vector<16x32xf32>
    %131 = arith.addf %130, %64 : vector<16x32xf32>
    %132 = math.tanh %131 : vector<16x32xf32>
    %133 = vector.broadcast %65 : vector<1x32xf32> to vector<16x32xf32>
    %134 = arith.mulf %132, %133 : vector<16x32xf32>
    %cst_80 = arith.constant dense<0.000000e+00> : vector<16xf32>
    %135 = vector.multi_reduction <add>, %134, %cst_80 [1] : vector<16x32xf32> to vector<16xf32>
    %136 = vector.shape_cast %135 : vector<16xf32> to vector<16x1xf32>
    %137 = vector.broadcast %66 : vector<1x1xf32> to vector<16x1xf32>
    %138 = arith.addf %136, %137 : vector<16x1xf32>
    %c0_81 = arith.constant 0 : index
    %c6 = arith.constant 6 : index
    %139 = vector.load %arg23[%c0_81, %c6] : memref<16x8xf32, #tpu.memory_space<vmem>>, vector<16x1xf32>
    tpu.vector_store %arg23[%c0_81, %c6], %138 {strides = array<i32>} : memref<16x8xf32, #tpu.memory_space<vmem>>, vector<16x1xf32>,
    %c0_82 = arith.constant 0 : index
    %c0_83 = arith.constant 0 : index
    %140 = vector.load %arg13[%c0_82, %c0_83] : memref<32x32xf32, #tpu.memory_space<vmem>>, vector<32x32xf32>
    %cst_84 = arith.constant dense<0.000000e+00> : vector<16x32xf32>
    %141 = tpu.matmul %132, %140, %cst_84 {dimension_numbers = #tpu.dot_dimension_numbers<[1], [0], [0], [1], [0, 0, 1, 1], [], []>} : vector<16x32xf32>, vector<32x32xf32>, vector<16x32xf32> -> vector<16x32xf32>
    %142 = arith.addf %141, %64 : vector<16x32xf32>
    %143 = math.tanh %142 : vector<16x32xf32>
    %144 = vector.broadcast %65 : vector<1x32xf32> to vector<16x32xf32>
    %145 = arith.mulf %143, %144 : vector<16x32xf32>
    %cst_85 = arith.constant dense<0.000000e+00> : vector<16xf32>
    %146 = vector.multi_reduction <add>, %145, %cst_85 [1] : vector<16x32xf32> to vector<16xf32>
    %147 = vector.shape_cast %146 : vector<16xf32> to vector<16x1xf32>
    %148 = vector.broadcast %66 : vector<1x1xf32> to vector<16x1xf32>
    %149 = arith.addf %147, %148 : vector<16x1xf32>
    %c0_86 = arith.constant 0 : index
    %c7 = arith.constant 7 : index
    %150 = vector.load %arg23[%c0_86, %c7] : memref<16x8xf32, #tpu.memory_space<vmem>>, vector<16x1xf32>
    tpu.vector_store %arg23[%c0_86, %c7], %149 {strides = array<i32>} : memref<16x8xf32, #tpu.memory_space<vmem>>, vector<16x1xf32>,
    %c0_87 = arith.constant 0 : index
    %c0_88 = arith.constant 0 : index
    %151 = vector.load %arg23[%c0_87, %c0_88] : memref<16x8xf32, #tpu.memory_space<vmem>>, vector<16x8xf32>
    %c0_89 = arith.constant 0 : index
    %c0_90 = arith.constant 0 : index
    %c0_91 = arith.constant 0 : index
    %152 = vector.load %arg18[%c0_89, %c0_90, %c0_91] : memref<1x16x8xf32, #tpu.memory_space<vmem>>, vector<1x16x8xf32>
    %153 = vector.shape_cast %152 : vector<1x16x8xf32> to vector<16x8xf32>
    %154 = vector.shape_cast %151 : vector<16x8xf32> to vector<1x16x8xf32>
    tpu.vector_store %arg18[%c0_89, %c0_90, %c0_91], %154 {strides = array<i32>} : memref<1x16x8xf32, #tpu.memory_space<vmem>>, vector<1x16x8xf32>,
    %c0_92 = arith.constant 0 : index
    %c0_93 = arith.constant 0 : index
    %c0_94 = arith.constant 0 : index
    %155 = vector.load %arg19[%c0_92, %c0_93, %c0_94] : memref<1x16x32xf32, #tpu.memory_space<vmem>>, vector<1x16x32xf32>
    %156 = vector.shape_cast %155 : vector<1x16x32xf32> to vector<16x32xf32>
    %157 = vector.shape_cast %24 : vector<16x32xf32> to vector<1x16x32xf32>
    tpu.vector_store %arg19[%c0_92, %c0_93, %c0_94], %157 {strides = array<i32>} : memref<1x16x32xf32, #tpu.memory_space<vmem>>, vector<1x16x32xf32>,
    %c0_95 = arith.constant 0 : index
    %c0_96 = arith.constant 0 : index
    %c0_97 = arith.constant 0 : index
    %158 = vector.load %arg20[%c0_95, %c0_96, %c0_97] : memref<1x16x32xf32, #tpu.memory_space<vmem>>, vector<1x16x32xf32>
    %159 = vector.shape_cast %158 : vector<1x16x32xf32> to vector<16x32xf32>
    %160 = vector.shape_cast %25 : vector<16x32xf32> to vector<1x16x32xf32>
    tpu.vector_store %arg20[%c0_95, %c0_96, %c0_97], %160 {strides = array<i32>} : memref<1x16x32xf32, #tpu.memory_space<vmem>>, vector<1x16x32xf32>,
    %c0_98 = arith.constant 0 : index
    %c0_99 = arith.constant 0 : index
    %c0_100 = arith.constant 0 : index
    %161 = vector.load %arg21[%c0_98, %c0_99, %c0_100] : memref<1x16x32xf32, #tpu.memory_space<vmem>>, vector<1x16x32xf32>
    %162 = vector.shape_cast %161 : vector<1x16x32xf32> to vector<16x32xf32>
    %163 = vector.shape_cast %51 : vector<16x32xf32> to vector<1x16x32xf32>
    tpu.vector_store %arg21[%c0_98, %c0_99, %c0_100], %163 {strides = array<i32>} : memref<1x16x32xf32, #tpu.memory_space<vmem>>, vector<1x16x32xf32>,
    %c0_101 = arith.constant 0 : index
    %c0_102 = arith.constant 0 : index
    %c0_103 = arith.constant 0 : index
    %164 = vector.load %arg22[%c0_101, %c0_102, %c0_103] : memref<1x16x32xf32, #tpu.memory_space<vmem>>, vector<1x16x32xf32>
    %165 = vector.shape_cast %164 : vector<1x16x32xf32> to vector<16x32xf32>
    %166 = vector.shape_cast %52 : vector<16x32xf32> to vector<1x16x32xf32>
    tpu.vector_store %arg22[%c0_101, %c0_102, %c0_103], %166 {strides = array<i32>} : memref<1x16x32xf32, #tpu.memory_space<vmem>>, vector<1x16x32xf32>,
    return
  }
  func.func @transform_0(%arg0: i32) -> (i32, i32, i32, i32) {
    %c0_i32 = arith.constant 0 : i32
    %c0_i32_0 = arith.constant 0 : i32
    %c0_i32_1 = arith.constant 0 : i32
    %c0_i32_2 = arith.constant 0 : i32
    return %arg0, %c0_i32, %c0_i32_0, %c0_i32_1 : i32, i32, i32, i32
  }
  func.func @transform_1(%arg0: i32) -> (i32, i32, i32) {
    %c0_i32 = arith.constant 0 : i32
    %c0_i32_0 = arith.constant 0 : i32
    %c0_i32_1 = arith.constant 0 : i32
    return %arg0, %c0_i32, %c0_i32_0 : i32, i32, i32
  }
  func.func @transform_2(%arg0: i32) -> (i32, i32, i32) {
    %c0_i32 = arith.constant 0 : i32
    %c0_i32_0 = arith.constant 0 : i32
    %c0_i32_1 = arith.constant 0 : i32
    return %arg0, %c0_i32, %c0_i32_0 : i32, i32, i32
  }
  func.func @transform_3(%arg0: i32) -> (i32, i32, i32) {
    %c0_i32 = arith.constant 0 : i32
    %c0_i32_0 = arith.constant 0 : i32
    %c0_i32_1 = arith.constant 0 : i32
    return %arg0, %c0_i32, %c0_i32_0 : i32, i32, i32
  }
  func.func @transform_4(%arg0: i32) -> (i32, i32) {
    %c0_i32 = arith.constant 0 : i32
    %c0_i32_0 = arith.constant 0 : i32
    %c0_i32_1 = arith.constant 0 : i32
    return %c0_i32, %c0_i32_0 : i32, i32
  }
  func.func @transform_5(%arg0: i32) -> (i32, i32) {
    %c0_i32 = arith.constant 0 : i32
    %c0_i32_0 = arith.constant 0 : i32
    %c0_i32_1 = arith.constant 0 : i32
    return %c0_i32, %c0_i32_0 : i32, i32
  }
  func.func @transform_6(%arg0: i32) -> (i32, i32) {
    %c0_i32 = arith.constant 0 : i32
    %c0_i32_0 = arith.constant 0 : i32
    %c0_i32_1 = arith.constant 0 : i32
    return %c0_i32, %c0_i32_0 : i32, i32
  }
  func.func @transform_7(%arg0: i32) -> (i32, i32) {
    %c0_i32 = arith.constant 0 : i32
    %c0_i32_0 = arith.constant 0 : i32
    %c0_i32_1 = arith.constant 0 : i32
    return %c0_i32, %c0_i32_0 : i32, i32
  }
  func.func @transform_8(%arg0: i32) -> (i32, i32) {
    %c0_i32 = arith.constant 0 : i32
    %c0_i32_0 = arith.constant 0 : i32
    %c0_i32_1 = arith.constant 0 : i32
    return %c0_i32, %c0_i32_0 : i32, i32
  }
  func.func @transform_9(%arg0: i32) -> (i32, i32) {
    %c0_i32 = arith.constant 0 : i32
    %c0_i32_0 = arith.constant 0 : i32
    %c0_i32_1 = arith.constant 0 : i32
    return %c0_i32, %c0_i32_0 : i32, i32
  }
  func.func @transform_10(%arg0: i32) -> (i32, i32) {
    %c0_i32 = arith.constant 0 : i32
    %c0_i32_0 = arith.constant 0 : i32
    %c0_i32_1 = arith.constant 0 : i32
    return %c0_i32, %c0_i32_0 : i32, i32
  }
  func.func @transform_11(%arg0: i32) -> (i32, i32) {
    %c0_i32 = arith.constant 0 : i32
    %c0_i32_0 = arith.constant 0 : i32
    %c0_i32_1 = arith.constant 0 : i32
    return %c0_i32, %c0_i32_0 : i32, i32
  }
  func.func @transform_12(%arg0: i32) -> (i32, i32) {
    %c0_i32 = arith.constant 0 : i32
    %c0_i32_0 = arith.constant 0 : i32
    %c0_i32_1 = arith.constant 0 : i32
    return %c0_i32, %c0_i32_0 : i32, i32
  }
  func.func @transform_13(%arg0: i32) -> (i32, i32) {
    %c0_i32 = arith.constant 0 : i32
    %c0_i32_0 = arith.constant 0 : i32
    %c0_i32_1 = arith.constant 0 : i32
    return %c0_i32, %c0_i32_0 : i32, i32
  }
  func.func @transform_14(%arg0: i32) -> (i32, i32) {
    %c0_i32 = arith.constant 0 : i32
    %c0_i32_0 = arith.constant 0 : i32
    %c0_i32_1 = arith.constant 0 : i32
    return %c0_i32, %c0_i32_0 : i32, i32
  }
  func.func @transform_15(%arg0: i32) -> (i32, i32) {
    %c0_i32 = arith.constant 0 : i32
    %c0_i32_0 = arith.constant 0 : i32
    %c0_i32_1 = arith.constant 0 : i32
    return %c0_i32, %c0_i32_0 : i32, i32
  }
  func.func @transform_16(%arg0: i32) -> (i32, i32) {
    %c0_i32 = arith.constant 0 : i32
    %c0_i32_0 = arith.constant 0 : i32
    %c0_i32_1 = arith.constant 0 : i32
    return %c0_i32, %c0_i32_0 : i32, i32
  }
  func.func @transform_17(%arg0: i32) -> (i32, i32, i32) {
    %c0_i32 = arith.constant 0 : i32
    %c0_i32_0 = arith.constant 0 : i32
    %c0_i32_1 = arith.constant 0 : i32
    return %arg0, %c0_i32, %c0_i32_0 : i32, i32, i32
  }
  func.func @transform_18(%arg0: i32) -> (i32, i32, i32) {
    %c0_i32 = arith.constant 0 : i32
    %c0_i32_0 = arith.constant 0 : i32
    %c0_i32_1 = arith.constant 0 : i32
    return %arg0, %c0_i32, %c0_i32_0 : i32, i32, i32
  }
  func.func @transform_19(%arg0: i32) -> (i32, i32, i32) {
    %c0_i32 = arith.constant 0 : i32
    %c0_i32_0 = arith.constant 0 : i32
    %c0_i32_1 = arith.constant 0 : i32
    return %arg0, %c0_i32, %c0_i32_0 : i32, i32, i32
  }
  func.func @transform_20(%arg0: i32) -> (i32, i32, i32) {
    %c0_i32 = arith.constant 0 : i32
    %c0_i32_0 = arith.constant 0 : i32
    %c0_i32_1 = arith.constant 0 : i32
    return %arg0, %c0_i32, %c0_i32_0 : i32, i32, i32
  }
  func.func @transform_21(%arg0: i32) -> (i32, i32, i32) {
    %c0_i32 = arith.constant 0 : i32
    %c0_i32_0 = arith.constant 0 : i32
    %c0_i32_1 = arith.constant 0 : i32
    return %arg0, %c0_i32, %c0_i32_0 : i32, i32, i32
  }
}

</mosaic_0001>

<bundles_post_ra>
// kernel: tpu_custom_call.1
= control target key start
LH: loop header
LB: loop body
LE: loop exit
PB: predicated region body
PF: predicated region fallthrough
CT: control target
= control target key end

     0   :  { %s2893_s0 = inlined_call_operand.vmem [shape: f32[2,2,16,8], index: 0, kind: input, shape index: {}]   ;;  %s2894_s1 = inlined_call_operand.vmem [shape: f32[2,16,4], index: 1, kind: input, shape index: {}]   ;;  %s2895_s2 = inlined_call_operand.vmem [shape: f32[2,16,32], index: 2, kind: input, shape index: {}]   ;;  %s2896_s3 = inlined_call_operand.vmem [shape: f32[2,16,32], index: 3, kind: input, shape index: {}]   ;;  %s2897_s4 = inlined_call_operand.vmem [shape: f32[8,32], index: 4, kind: input, shape index: {}]   ;;  %s2898_s5 = inlined_call_operand.vmem [shape: f32[1,32], index: 5, kind: input, shape index: {}]   ;;  %s2899_s6 = inlined_call_operand.vmem [shape: f32[32,64], index: 6, kind: input, shape index: {}]   ;;  %s2900_s7 = inlined_call_operand.vmem [shape: f32[1,64], index: 7, kind: input, shape index: {}]   ;;  %s2901_s8 = inlined_call_operand.vmem [shape: f32[4,32], index: 8, kind: input, shape index: {}]   ;;  %s2902_s9 = inlined_call_operand.vmem [shape: f32[1,32], index: 9, kind: input, shape index: {}]   ;;  %s2903_s10 = inlined_call_operand.hbm [shape: f32[32,64], index: 10, kind: input, shape index: {}]   ;;  %s2904_s11 = inlined_call_operand.vmem [shape: f32[1,64], index: 11, kind: input, shape index: {}]   ;;  %s2905_s12 = inlined_call_operand.hbm [shape: f32[32,32], index: 12, kind: input, shape index: {}]   ;;  %s2906_s13 = inlined_call_operand.hbm [shape: f32[32,32], index: 13, kind: input, shape index: {}]   ;;  %s2907_s14 = inlined_call_operand.vmem [shape: f32[1,32], index: 14, kind: input, shape index: {}]   ;;  %s2908_s15 = inlined_call_operand.vmem [shape: f32[1,32], index: 15, kind: input, shape index: {}]   ;;  %s2909_s16 = inlined_call_operand.<no memory space> [shape: f32[1,1], index: 16, kind: input, shape index: {}]   ;;  %s2910_s17 = inlined_call_operand.vmem [shape: f32[2,16,8], index: 17, kind: output, shape index: {0}]   ;;  %s2911_s18 = inlined_call_operand.hbm [shape: f32[2,16,32], index: 18, kind: output, shape index: {1}]   ;;  %s2912_s19 = inlined_call_operand.hbm [shape: f32[2,16,32], index: 19, kind: output, shape index: {2}]   ;;  %s2913_s20 = inlined_call_operand.hbm [shape: f32[2,16,32], index: 20, kind: output, shape index: {3}]   ;;  %s2914_s21 = inlined_call_operand.hbm [shape: f32[2,16,32], index: 21, kind: output, shape index: {4}]  }
   0x1   :  { %2925 = sst [smem:[#allocation27_spill]] %s2893_s0  ;;  %v27_v0 = vstv %s2909_s16 }
   0x2   :  { %2926 = sst [smem:[#allocation28_spill]] %s2894_s1  ;;  %28 = vst [vmem:[#allocation3] sm:$0x1] %v27_v0 }
   0x3   :  { %2927 = sst [smem:[#allocation29_spill]] %s2895_s2 }
   0x4   :  { %2928 = sst [smem:[#allocation30_spill]] %s2896_s3 }
   0x5   :  { %2929 = sst [smem:[#allocation31_spill]] %s2897_s4 }
   0x6   :  { %2930 = sst [smem:[#allocation32_spill]] %s2898_s5 }
   0x7   :  { %2931 = sst [smem:[#allocation33_spill]] %s2899_s6 }
   0x8   :  { %2932 = sst [smem:[#allocation34_spill]] %s2900_s7 }
   0x9   :  { %2933 = sst [smem:[#allocation35_spill]] %s2901_s8 }
   0xa   :  { %2934 = sst [smem:[#allocation36_spill]] %s2902_s9 }
   0xb   :  { %2935 = sst [smem:[#allocation37_spill]] %s2903_s10 }
   0xc   :  { %2936 = sst [smem:[#allocation38_spill]] %s2904_s11 }
   0xd   :  { %2937 = sst [smem:[#allocation39_spill]] %s2905_s12 }
   0xe   :  { %29 = vsyncpa [#allocation5], 0 }
   0xf   :  { %30 = vsyncpa [#allocation8], 0 }
  0x10   :  { %31 = vsyncpa [#allocation6], 0 }
  0x11   :  { %33 = vsyncpa [#allocation6 + $0x1], 0 }
  0x12   :  { %34 = vsyncpa [#allocation12], 0 }
  0x13   :  { %36 = vsyncpa [#allocation12 + $0x1], 0 }
  0x14   :  { %37 = vsyncpa [#allocation15], 0 }
  0x15   :  { %39 = vsyncpa [#allocation15 + $0x1], 0  ;;  %s2447_s26 = smov 0   ;;  %s2449_s27 = smov 0  }
  0x16   :  { %s2451_s3 = smov 0   ;;  %s2453_s28 = smov 0  }
  0x17 LB: > { %2938 = sst [smem:[#allocation21_spill]] %s2305_s26  ;;  %s2468_s16 = sadd.s32 4294967295, %s2317_s28   ;;  %s2317_s28 = sphi %s2453_s28, %s2966_s28   ;;  %s2313_s3 = sphi %s2451_s3, %s2968_s3   ;;  %s2309_s27 = sphi %s2449_s27, %s2970_s27   ;;  %s2305_s26 = sphi %s2447_s26, %s2969_s26  }
  0x18   : > { %2939 = sst [smem:[#allocation22_spill]] %s2313_s3  ;;  %s2915_s29 = sadd.s32 4294967294, %s2317_s28  }
  0x19   : > { %2940 = sst [smem:[#allocation23_spill]] %s2317_s28  ;;  %s2472_s0 = sadd.s32 1, %s2317_s28  }
  0x1a   : > { %2941 = sst [smem:[#allocation24_spill]] %s2472_s0  ;;  %s455_s4 = sadd.s32 1, %s2313_s3 }
  0x1b   : > { %s452_s30 = ssub.s32 %s2317_s28, %s2472_s0  ;;  %p465_p0 = scmp.ne.s32.totalorder %s2313_s3, %s2309_s27 }
  0x1c   : > { %p453_p1 = scmp.eq.s32.totalorder %s452_s30, 0  ;;  %p466_p2 = scmp.eq.s32.totalorder %s2468_s16, 1 }
  0x1d   : > { %p471_p3 = scmp.ne.s32.totalorder %s2309_s27, %s2305_s26  ;;  %p472_p4 = scmp.eq.s32.totalorder %s2915_s29, 1 }
  0x1e   : > { %s2485_s5 = scalar_select %p453_p1, %s2313_s3, %s455_s4  }
  0x1f   : > { %p2487_p5 = por %p466_p2, %p465_p0  ;;  %p2491_p6 = por %p472_p4, %p471_p3 }
  0x20   : > { %2942 = sst [smem:[#allocation25_spill]] %s2485_s5  ;;  %p1851_p7 = scmp.ge.s32.totalorder %s2317_s28, 1 }
  0x21   : > { %s2944_s23 = scalar_select %p2491_p6, 1, 0 }
  0x22   : > { %p557_p8 = scmp.lt.s32.totalorder %s2317_s28, 3  ;;  %p1968_p9 = scmp.eq.s32.totalorder %s2468_s16, 0 }
  0x23   : > { %2945 = sst [smem:[#allocation26_spill]] %s2944_s23  ;;  %s2319_s3 = smov [#allocation7]  }
  0x24   : > { %p2498_p10 = pnand %p1851_p7, %p557_p8  ;;  %s2947_s12 = sld [smem:[#allocation39_spill]] }
  0x25   : > { %s2948_s10 = sld [smem:[#allocation37_spill]]  ;;  %s605_s0 = sshll.u32 %s2319_s3, 4  ;;  %s606_s0 = int_to_ptr.vmem [resolvable:$true] %s605_s0 }
  0x26   : > { %p1945_p11 = pneg %p2498_p10  ;;  %s2320_s24 = smov 128  }
  0x27   : > { %s2321_s2 = smov 8   ;;  %s2323_s26 = smov [#allocation9]  }
  0x28   : > { %p2512_p12 = pnand %p1968_p9, %p1945_p11  ;;  %s619_s28 = sshll.u32 %s2323_s26, 4  ;;  %s620_s28 = int_to_ptr.vmem [resolvable:$true] %s619_s28 }
  0x2a   : > { %s603_s25 = sshll.u32 %s2947_s12, 4  ;;  %s2322_s12 = smov [#allocation4]   ;;  %s604_s25 = int_to_ptr.hbm [resolvable:$true] %s603_s25 }
  0x2b   : > { %s586_s29 = sshll.u32 %s2948_s10, 4  ;;  %s588_s23 = sshll.u32 %s2322_s12, 4  ;;  %s587_s29 = int_to_ptr.hbm [resolvable:$true] %s586_s29  ;;  %s589_s23 = int_to_ptr.vmem [resolvable:$true] %s588_s23 }
  0x2c   : > { %1951 = dma.hbm_to_vmem [thread:$0]  (!%p2512_p12), %s604_s25, 512, %s606_s0, [#allocation8], %s2320_s24, %s2320_s24, %s2321_s2  }
  0x2d   : > { %s617_s10 = sshll.u32 %s2906_s13, 4  ;;  %676 = sbr.rel (%p2498_p10) target bundleno = 1706 (0x6aa), region = 88  ;;  %s618_s10 = int_to_ptr.hbm [resolvable:$true] %s617_s10 }
  0x2e   : > { %1948 = dma.hbm_to_vmem [thread:$0]  (!%p2512_p12), %s587_s29, 512, %s589_s23, [#allocation5], %s2320_s24, %s2320_s24, %s2321_s2  }
  0x2f   : > { %1954 = dma.hbm_to_vmem [thread:$0]  (!%p2512_p12), %s618_s10, 512, %s620_s28, [#allocation8], %s2320_s24, %s2320_s24, %s2321_s2  }
  0x32   : > { %2284 = dma.done.wait (%p1968_p9), [#allocation5], 512  }
  0x33   : > { %2286 = vsyncadd (%p1968_p9), [#allocation5], 4294966784 }
  0x34   : > { %2288 = dma.done.wait (%p1968_p9), [#allocation8], 1024  }
  0x35   : > { %2290 = vsyncadd (%p1968_p9), [#allocation8], 4294966272  ;;  %p782_p13 = scmp.lt.s32.totalorder %s2468_s16, 1  ;;  %s2950_s28 = sld [smem:[#allocation27_spill]]  ;;  %vm816_vm0 = vcmask 64512   ;;  %vm942_vm1 = vcmask 1043456  }
  0x36   : > { %s2951_s23 = sld [smem:[#allocation31_spill]]  ;;  %vm935_vm2 = vcmask 31744   ;;  %v974_v9 = vld [vmem:[#allocation4 + $0x18] sm:$0xff]  ;;  %v973_v10 = vld [vmem:[#allocation4 + $0x10] sm:$0xff]  ;;  %v972_v11 = vld [vmem:[#allocation4 + $0x8] sm:$0xff]  ;;  %vm874_vm3 = vcmask 261120  }
  0x37   : > { %s783_s12 = scalar_select %p782_p13, %s2468_s16, 1  ;;  %997 = vmatpush.msra.mxu3 %v974_v9  ;;  %v971_v13 = vld [vmem:[#allocation4] sm:$0xff]  ;;  %v1035_v41 = vld [vmem:[#allocation9 + $0x18] sm:$0xff]  ;;  %v1034_v42 = vld [vmem:[#allocation9 + $0x10] sm:$0xff]  ;;  %vm1087_vm4 = vcmask 7168   ;;  %vm1143_vm5 = vcmask 15368  }
  0x38   : > { %s2952_s8 = sld [smem:[#allocation35_spill]]  ;;  %v2578_v43 = vld [vmem:[#allocation7 + $0x18] sm:$0xff]  ;;  %v2580_v44 = vld [vmem:[#allocation7 + $0x10] sm:$0xff]  ;;  %v1033_v47 = vld [vmem:[#allocation9 + $0x8] sm:$0xff]  ;;  %s2325_s25 = smov 1   ;;  %vm1199_vm6 = vcmask 23568  }
  0x39   : > { %s1915_s10 = sshll.u32 %s783_s12, 5  ;;  %s2546_s24 = sshll.u32 %s783_s12, 4  ;;  %998 = vmatpush.msra.mxu3 %v973_v10  ;;  %vm1255_vm7 = vcmask 31768   ;;  %vm1311_vm8 = vcmask 39968   ;;  %vm1367_vm9 = vcmask 48168  }
  0x3a   : > { %s2953_s30 = sld [smem:[#allocation28_spill]]  ;;  %s2330_s3 = smov 6  }
  0x3b   : > { %s786_s29 = scalar_lea.vmem %s2950_s28, %s1915_s10  ;;  %999 = vmatpush.msra.mxu3 %v972_v11  ;;  %s2954_s6 = sld [smem:[#allocation33_spill]] }
  0x3c   : > { %v811_v1 = vld [vmem:[%s2951_s23] sm:$0xff]  ;;  %v810_v3 = vld [vmem:[%s786_s29 + $0x18] sm:$0xff]  ;;  %v808_v5 = vld [vmem:[%s786_s29 + $0x8] sm:$0xff]  ;;  %s2955_s2 = sld [smem:[#allocation32_spill]]  ;;  %s2591_s28 = sand.u32 1, %s2309_s27  }
  0x3d   : > { %v807_v2 = vld [vmem:[%s786_s29] sm:$0xff]  ;;  %844 = vmatpush.msra.mxu0 %v811_v1  ;;  %1924 = vmatpush.msra.mxu2 %v811_v1  ;;  %v809_v7 = vld [vmem:[%s786_s29 + $0x10] sm:$0xff]  ;;  %s2956_s9 = sld [smem:[#allocation36_spill]]  ;;  %s2598_s29 = sshll.u32 %s2591_s28, 4 }
  0x3e   : > { %v930_v4 = vld [vmem:[%s2952_s8] sm:$0xf]  ;;  %1874 = vmatmul.msk.f32.vlgmr.msra.gmra.mxu0 %vm816_vm0, %v807_v2  ;;  %1877 = vmatmul.msk.f32.vlgmr.msra.gmra.mxu2 %vm816_vm0, %v810_v3  ;;  %s2957_s7 = sld [smem:[#allocation34_spill]]  ;;  %s2605_s0 = scalar_lea.vmem [#allocation10], %s2598_s29 }
  0x3f   : > { %1880 = vmatpush.msk.msrb.mxu2 %vm942_vm1, %v930_v4  ;;  %1000 = vmatpush.msra.mxu3 %v971_v13  ;;  %s2958_s11 = sld [smem:[#allocation38_spill]]  ;;  %s2613_s5 = scalar_lea.vmem [#allocation13], %s2598_s29  ;;  %v1032_v13 = vld [vmem:[#allocation9] sm:$0xff] }
  0x40   : > { %s791_s10 = scalar_lea.vmem %s2953_s30, %s2546_s24  ;;  %1224 = vmatpush.msrb.mxu0 %v2578_v43  ;;  %s2923_s23 = smov 96  }
  0x41   : > { %v928_v6 = vld [vmem:[%s791_s10] sm:$0xff]  ;;  %v929_v8 = vld [vmem:[%s791_s10 + $0x8] sm:$0xff]  ;;  %v869_v12 = vld [vmem:[%s2954_s6 + $0x18] sm:$0xff]  ;;  %1058 = vmatpush.msra.mxu2 %v1035_v41  ;;  %1168 = vmatpush.msrb.mxu3 %v2578_v43  ;;  %s2960_s12 = sld [smem:[#allocation29_spill]]  ;;  %s2328_s30 = smov 4  }
  0x42   : > { %893 = vmatpush.msra.mxu1 %v869_v12  ;;  %v868_v14 = vld [vmem:[%s2954_s6 + $0x10] sm:$0xff]  ;;  %v867_v15 = vld [vmem:[%s2954_s6 + $0x8] sm:$0xff]  ;;  %v866_v16 = vld [vmem:[%s2954_s6] sm:$0xff]  ;;  %1225 = vmatpush.msrb.mxu0 %v2580_v44  ;;  %s2961_s10 = smov 96  }
  0x43   : > { %v2022_v20 = vld [vmem:[%s2955_s2] ss:$0 sm:$0xff]  ;;  %1059 = vmatpush.msra.mxu2 %v1034_v42  ;;  %1169 = vmatpush.msrb.mxu3 %v2580_v44  ;;  %s2959_s2 = sld [smem:[#allocation30_spill]] }
  0x44   : > { %894 = vmatpush.msra.mxu1 %v868_v14  ;;  %v2023_v21 = vld [vmem:[%s2956_s9] ss:$0 sm:$0xff]  ;;  %v1090_v14 = vld [vmem:[#allocation7] sm:$0xff] }
  0x45   : > { %v2024_v45 = vld [vmem:[%s2957_s7] ss:$0 sm:$0xff]  ;;  %1060 = vmatpush.msra.mxu2 %v1033_v47 }
  0x46   : > { %1875 = vmatmul.msk.f32.gmra.mxu0 %vm816_vm0, %v808_v5  ;;  %1881 = vmatmul.msk.f32.vlgmr.msrb.gmra.mxu2 %vm935_vm2, %v928_v6  ;;  %v2025_v46 = vld [vmem:[%s2958_s11] ss:$0 sm:$0xff]  ;;  %s2175_s11 = scalar_lea.hbm %s2911_s18, 32 }
  0x47   : > { %895 = vmatpush.msra.mxu1 %v867_v15  ;;  %v1091_v12 = vld [vmem:[#allocation7 + $0x8] sm:$0xff]  ;;  %1061 = vmatpush.msra.mxu2 %v1032_v13  ;;  %s796_s26 = scalar_lea.vmem %s2960_s12, %s2546_s24  ;;  %s2329_s12 = smov 5  }
  0x48   : > { %1170 = vmatpush.msrb.mxu3 %v1091_v12  ;;  %1226 = vmatpush.msrb.mxu0 %v1091_v12  ;;  %v2028_v41 = vld [vmem:[%s2907_s14] ss:$0 sm:$0xff] }
  0x49   : > { %896 = vmatpush.msra.mxu1 %v866_v16  ;;  %1280 = vmatpush.msrb.mxu2 %v2578_v43  ;;  %s801_s4 = scalar_lea.vmem %s2959_s2, %s2546_s24  ;;  %v908_v16 = vld [vmem:[%s796_s26] sm:$0xff]  ;;  %s2326_s2 = smov 2  }
  0x4a   : > { %1171 = vmatpush.msrb.mxu3 %v1090_v14  ;;  %1227 = vmatpush.msrb.mxu0 %v1090_v14  ;;  %v1012_v15 = vld [vmem:[%s801_s4] sm:$0xff] }
  0x4b   : > { %1112 = vmatpush.msrb.mxu1 %v2578_v43  ;;  %1281 = vmatpush.msrb.mxu2 %v2580_v44 }
  0x4c   : > { %1448 = vmatpush.msra.mxu0 %v2578_v43 }
  0x4d   : > { %1113 = vmatpush.msrb.mxu1 %v2580_v44  ;;  %1282 = vmatpush.msrb.mxu2 %v1091_v12 }
  0x4e   : > { %1876 = vmatmul.msk.f32.gmra.mxu0 %vm816_vm0, %v809_v7  ;;  %1882 = vmatmul.msk.f32.gmra.mxu2 %vm935_vm2, %v929_v8 }
  0x4f   : > { %1114 = vmatpush.msrb.mxu1 %v1091_v12  ;;  %1449 = vmatpush.msra.mxu0 %v2580_v44 }
  0x50   : > { %1283 = vmatpush.msrb.mxu2 %v1090_v14 }
  0x51   : > { %1115 = vmatpush.msrb.mxu1 %v1090_v14  ;;  %1450 = vmatpush.msra.mxu0 %v1091_v12 }
  0x53   : > { %1451 = vmatpush.msra.mxu0 %v1090_v14 }
  0xbb   : > { %v846_v17 = vpop.f32.mrf.mxu0 }
  0xbc   : > { %v847_v23 = vadd.f32 %v2022_v20, %v846_v17 }
  0xbe   : > { %v858_v28 = vmax.f32 %v847_v23, 0.0 }
  0xc1   : > { %v855_v18 = vpop.f32.mrf.mxu2 }
  0xc2   : > { %v856_v29 = vadd.f32 %v2022_v20, %v855_v18 }
  0xc3   : > { %v849_v19 = vpop.f32.mrf.mxu0 }
  0xc4   : > { %v850_v30 = vadd.f32 %v2022_v20, %v849_v19  ;;  %v861_v34 = vmax.f32 %v856_v29, 0.0 }
  0xc6   : > { %v859_v35 = vmax.f32 %v850_v30, 0.0 }
  0xc8   : > { %v863_v39 = vadd.f32 %v861_v34, %v859_v35 }
  0xc9   : > { %v963_v22 = vpop.f32.mrf.mxu2 }
  0xca   : > { %v964_v24 = vadd.f32 %v2023_v21, %v963_v22  ;;  %v865_v40 = vmul.f32 0.5, %v863_v39 }
  0xcb   : > { %v852_v25 = vpop.f32.mrf.mxu0 }
  0xcc   : > { %v969_v26 = vmax.f32 %v964_v24, 0.0  ;;  %v853_v27 = vadd.f32 %v2022_v20, %v852_v25  ;;  %v2653_v20 = vld [vmem:[%s2908_s15] ss:$0 sm:$0xff] }
  0xce   : > { %v860_v31 = vmax.f32 %v853_v27, 0.0  ;;  %1883 = vmatmul.msk.f32.vlgmr.msra.gmra.mxu3 %vm874_vm3, %v969_v26  ;;  %v1013_v26 = vld [vmem:[%s801_s4 + $0x8] sm:$0xff]  ;;  %s2327_s4 = smov 3  }
  0xcf   : > { %1392 = vmatpush.msra.mxu3 %v2578_v43  ;;  %v909_v27 = vld [vmem:[%s796_s26 + $0x8] sm:$0xff]  ;;  %s2735_s26 = scalar_lea.vmem [#allocation11], %s2598_s29 }
  0xd0   : > { %v862_v32 = vadd.f32 %v860_v31, %v858_v28 }
  0xd1   : > { %v966_v33 = vpop.f32.mrf.mxu2  ;;  %1393 = vmatpush.msra.mxu3 %v2580_v44 }
  0xd2   : > { %v864_v36 = vmul.f32 0.5, %v862_v32  ;;  %v967_v37 = vadd.f32 %v2023_v21, %v966_v33 }
  0xd3   : > { %1394 = vmatpush.msra.mxu3 %v1091_v12 }
  0xd4   : > { %v970_v38 = vmax.f32 %v967_v37, 0.0  ;;  %1878 = vmatmul.msk.f32.vlgmr.msra.gmra.mxu1 %vm874_vm3, %v864_v36  ;;  %v2667_v36 = vld [vmem:[#allocation3] ss:$0 sm:$0xff] }
  0xd5   : > { %1336 = vmatpush.msra.mxu1 %v2578_v43  ;;  %1395 = vmatpush.msra.mxu3 %v1090_v14 }
  0xd6   : > { %1884 = vmatmul.msk.f32.gmra.mxu3 %vm874_vm3, %v970_v38 }
  0xd7   : > { %1337 = vmatpush.msra.mxu1 %v2580_v44 }
  0xd9   : > { %1338 = vmatpush.msra.mxu1 %v1091_v12 }
  0xdb   : > { %1339 = vmatpush.msra.mxu1 %v1090_v14 }
  0xdc   : > { %1879 = vmatmul.msk.f32.gmra.mxu1 %vm874_vm3, %v865_v40 }
 0x151   : > { %v898_v48 = vpop.f32.mrf.mxu1  ;;  %v1002_v49 = vpop.f32.mrf.mxu3 }
 0x152   : > { %v899_v50 = vadd.f32 %v2024_v45, %v898_v48  ;;  %v1003_v51 = vadd.f32 %v2025_v46, %v1002_v49 }
 0x154   : > { %v904_v52 = vmax.f32 %v899_v50, -100.0  ;;  %v1008_v53 = vmax.f32 %v1003_v51, -100.0 }
 0x156   : > { %v2600_v54 = vmin.f32 %v904_v52, 85.0  ;;  %v2602_v55 = vmin.f32 %v1008_v53, 85.0 }
 0x158   : > { %1486 = vst.msk [vmem:[%s2605_s0] sm:$0xff] %vm874_vm3, %v2600_v54  ;;  %v1014_v56 = vmul.f32 0.5, %v2602_v55  ;;  %v910_v57 = vmul.f32 0.5, %v2600_v54 }
 0x159   : > { %1498 = vst.msk [vmem:[%s2613_s5] sm:$0xff] %vm874_vm3, %v2602_v55  ;;  %v901_v58 = vpop.f32.mrf.mxu1  ;;  %v1005_v59 = vpop.f32.mrf.mxu3 }
 0x15a   : > { %v902_v60 = vadd.f32 %v2024_v45, %v901_v58  ;;  %v1006_v61 = vadd.f32 %v2025_v46, %v1005_v59  ;;  %v1016_v62 = vmul.f32 1.442695, %v1014_v56  ;;  %v912_v63 = vmul.f32 1.442695, %v910_v57 }
 0x15c   : > { %v905_v0 = vmax.f32 %v902_v60, -100.0  ;;  %v1009_v1 = vmax.f32 %v1006_v61, -100.0  ;;  %2029 = vpow2.f32 %v1016_v62 }
 0x15d   : > { %2031 = vpow2.f32 %v912_v63 }
 0x15e   : > { %v2618_v2 = vmin.f32 %v905_v0, 85.0  ;;  %v2620_v3 = vmin.f32 %v1009_v1, 85.0 }
 0x160   : > { %v911_v4 = vmul.f32 0.5, %v2618_v2  ;;  %1487 = vst.msk [vmem:[%s2605_s0 + $0x8] sm:$0xff] %vm874_vm3, %v2618_v2  ;;  %v1015_v5 = vmul.f32 0.5, %v2620_v3 }
 0x161   : > { %1499 = vst.msk [vmem:[%s2613_s5 + $0x8] sm:$0xff] %vm874_vm3, %v2620_v3 }
 0x162   : > { %v2030_v6 = vpop.eup %2029  ;;  %v914_v7 = vmul.f32 1.442695, %v911_v4  ;;  %v1018_v8 = vmul.f32 1.442695, %v1015_v5 }
 0x163   : > { %v2032_v9 = vpop.eup %2031  ;;  %1022 = vrot.lane.b32.xlu1 %v2030_v6, %s2923_s23 }
 0x164   : > { %2033 = vpow2.f32 %v914_v7  ;;  %918 = vrot.lane.b32.xlu0 %v2032_v9, %s2923_s23 }
 0x165   : > { %2035 = vpow2.f32 %v1018_v8 }
 0x16a   : > { %v2034_v10 = vpop.eup %2033 }
 0x16b   : > { %v2036_v11 = vpop.eup %2035 }
 0x16c   : > { %1024 = vrot.lane.b32.xlu1 %v2036_v11, %s2923_s23  ;;  %920 = vrot.lane.b32.xlu0 %v2034_v10, %s2923_s23  ;;  %s2758_s23 = sshll.u32 %s2468_s16, 4 }
 0x1d5   : > { %v1023_v17 = vpop.permute.xlu1 %1022 }
 0x1d6   : > { %v1028_v18 = vmul.f32 %v1023_v17, %v1012_v15  ;;  %v919_v19 = vpop.permute.xlu0 %918 }
 0x1d7   : > { %v924_v21 = vmul.f32 %v919_v19, %v908_v16 }
 0x1d8   : > { %v1030_v22 = vadd.f32 %v1028_v18, %v2602_v55 }
 0x1d9   : > { %v926_v23 = vadd.f32 %v924_v21, %v2600_v54 }
 0x1da   : > { %1887 = vmatmul.msk.f32.vlgmr.msrb.gmra.mxu1 %vm874_vm3, %v1030_v22  ;;  %v1074_v24 = vmul.f32 %v2653_v20, %v1030_v22 }
 0x1db   : > { %1885 = vmatmul.msk.f32.vlgmr.msra.gmra.mxu2 %vm874_vm3, %v926_v23 }
 0x1dc   : > { %v1076_v25 = vsel %vm874_vm3, %v1074_v24, 0.0 }
 0x1dd   : > { %1077 = vadd.xlane.f32.xlu2 %v1076_v25 }
 0x1de   : > { %v1025_v28 = vpop.permute.xlu1 %1024  ;;  %v921_v29 = vpop.permute.xlu0 %920 }
 0x1df   : > { %v1029_v30 = vmul.f32 %v1025_v28, %v1013_v26  ;;  %v925_v31 = vmul.f32 %v921_v29, %v909_v27 }
 0x1e1   : > { %v1031_v32 = vadd.f32 %v1029_v30, %v2620_v3  ;;  %v927_v33 = vadd.f32 %v925_v31, %v2618_v2 }
 0x1e3   : > { %1886 = vmatmul.msk.f32.gmra.mxu2 %vm874_vm3, %v927_v33  ;;  %1888 = vmatmul.msk.f32.gmra.mxu1 %vm874_vm3, %v1031_v32  ;;  %v1075_v34 = vmul.f32 %v2653_v20, %v1031_v32 }
 0x1e5   : > { %v1079_v35 = vsel %vm874_vm3, %v1075_v34, 0.0 }
 0x1e6   : > { %1080 = vadd.xlane.f32.xlu2 %v1079_v35 }
 0x250   : > { %v1078_v37 = vpop.xlane.xlu2 %1077 }
 0x251   : > { %v1085_v38 = vadd.f32 %v2667_v36, %v1078_v37 }
 0x253   : > { %1088 = vst.msk [vmem:[#allocation2] sm:$0xff] %vm1087_vm4, %v1085_v38 }
 0x257   : > { %v1117_v42 = vpop.f32.mrf.mxu1 }
 0x259   : > { %v1081_v39 = vpop.xlane.xlu2 %1080 }
 0x25a   : > { %v1086_v40 = vadd.f32 %v2667_v36, %v1081_v39 }
 0x25c   : > { %1089 = vst.msk [vmem:[#allocation2 + $0x8] sm:$0xff] %vm1087_vm4, %v1086_v40 }
 0x25e   : > { %v1063_v43 = vpop.f32.mrf.mxu2 }
 0x25f   : > { %v2674_v44 = vadd.f32 %v2028_v41, %v1063_v43 }
 0x260   : > { %v1120_v48 = vpop.f32.mrf.mxu1 }
 0x261   : > { %v1118_v45 = vadd.f32 %v1117_v42, %v2674_v44 }
 0x263   : > { %2037 = vtanh.f32 %v1118_v45 }
 0x266   : > { %v1066_v46 = vpop.f32.mrf.mxu2 }
 0x267   : > { %v2677_v47 = vadd.f32 %v2028_v41, %v1066_v46 }
 0x269   : > { %v2038_v49 = vpop.eup %2037  ;;  %v1121_v50 = vadd.f32 %v1120_v48, %v2677_v47 }
 0x26a   : > { %1889 = vmatmul.msk.f32.vlgmr.msrb.gmra.mxu3 %vm874_vm3, %v2038_v49  ;;  %v1125_v51 = vmul.f32 %v2038_v49, %v2653_v20 }
 0x26b   : > { %2039 = vtanh.f32 %v1121_v50 }
 0x26c   : > { %v1127_v52 = vsel %vm874_vm3, %v1125_v51, 0.0 }
 0x26d   : > { %1128 = vadd.xlane.f32.xlu0 %v1127_v52 }
 0x271   : > { %v2040_v53 = vpop.eup %2039 }
 0x272   : > { %1890 = vmatmul.msk.f32.gmra.mxu3 %vm874_vm3, %v2040_v53  ;;  %v1126_v56 = vmul.f32 %v2040_v53, %v2653_v20 }
 0x274   : > { %v1130_v57 = vsel %vm874_vm3, %v1126_v56, 0.0 }
 0x275   : > { %1131 = vadd.xlane.f32.xlu1 %v1130_v57 }
 0x2e0   : > { %v1129_v58 = vpop.xlane.xlu0 %1128 }
 0x2e1   : > { %v1133_v59 = vadd.f32 %v2667_v36, %v1129_v58 }
 0x2e3   : > { %1137 = vrot.lane.b32.xlu2 %v1133_v59, %s2325_s25 }
 0x2e8   : > { %v1132_v60 = vpop.xlane.xlu1 %1131 }
 0x2e9   : > { %v1134_v61 = vadd.f32 %v2667_v36, %v1132_v60 }
 0x2eb   : > { %1139 = vrot.lane.b32.xlu2 %v1134_v61, %s2325_s25 }
 0x2ed   : > { %v1173_v62 = vpop.f32.mrf.mxu3 }
 0x2ee   : > { %v1174_v63 = vadd.f32 %v1173_v62, %v2674_v44 }
 0x2f0   : > { %2041 = vtanh.f32 %v1174_v63 }
 0x2f5   : > { %v1176_v0 = vpop.f32.mrf.mxu3 }
 0x2f6   : > { %v2042_v1 = vpop.eup %2041  ;;  %v1177_v4 = vadd.f32 %v1176_v0, %v2677_v47 }
 0x2f7   : > { %1891 = vmatmul.msk.f32.vlgmr.msrb.gmra.mxu0 %vm874_vm3, %v2042_v1  ;;  %v1181_v8 = vmul.f32 %v2042_v1, %v2653_v20 }
 0x2f8   : > { %2043 = vtanh.f32 %v1177_v4 }
 0x2f9   : > { %v1183_v9 = vsel %vm874_vm3, %v1181_v8, 0.0 }
 0x2fe   : > { %v2044_v5 = vpop.eup %2043 }
 0x2ff   : > { %1892 = vmatmul.msk.f32.gmra.mxu0 %vm874_vm3, %v2044_v5  ;;  %v1182_v6 = vmul.f32 %v2044_v5, %v2653_v20 }
 0x301   : > { %v1186_v7 = vsel %vm874_vm3, %v1182_v6, 0.0 }
 0x302   : > { %1187 = vadd.xlane.f32.xlu0 %v1186_v7 }
 0x314   : > { %1184 = vadd.xlane.f32.xlu2 %v1183_v9 }
 0x33d   : > { %v1138_v10 = vpop.permute.xlu2 %1137 }
 0x33e   : > { %1144 = vst.msk [vmem:[#allocation2] sm:$0xff] %vm1143_vm5, %v1138_v10 }
 0x345   : > { %v1140_v11 = vpop.permute.xlu2 %1139 }
 0x346   : > { %1145 = vst.msk [vmem:[#allocation2 + $0x8] sm:$0xff] %vm1143_vm5, %v1140_v11 }
 0x374   : > { %v1229_v12 = vpop.f32.mrf.mxu0 }
 0x375   : > { %v1230_v13 = vadd.f32 %v1229_v12, %v2674_v44  ;;  %v1188_v14 = vpop.xlane.xlu0 %1187 }
 0x376   : > { %v1190_v15 = vadd.f32 %v2667_v36, %v1188_v14 }
 0x377   : > { %2045 = vtanh.f32 %v1230_v13 }
 0x378   : > { %1195 = vrot.lane.b32.xlu0 %v1190_v15, %s2326_s2 }
 0x37c   : > { %v1232_v16 = vpop.f32.mrf.mxu0 }
 0x37d   : > { %v2046_v17 = vpop.eup %2045  ;;  %v1233_v18 = vadd.f32 %v1232_v16, %v2677_v47 }
 0x37e   : > { %1893 = vmatmul.msk.f32.vlgmr.msrb.gmra.mxu2 %vm874_vm3, %v2046_v17  ;;  %v1237_v25 = vmul.f32 %v2046_v17, %v2653_v20 }
 0x37f   : > { %2047 = vtanh.f32 %v1233_v18 }
 0x380   : > { %v1239_v26 = vsel %vm874_vm3, %v1237_v25, 0.0 }
 0x385   : > { %v2048_v19 = vpop.eup %2047 }
 0x386   : > { %1894 = vmatmul.msk.f32.gmra.mxu2 %vm874_vm3, %v2048_v19  ;;  %v1238_v23 = vmul.f32 %v2048_v19, %v2653_v20 }
 0x387   : > { %v1185_v21 = vpop.xlane.xlu2 %1184 }
 0x388   : > { %v1189_v22 = vadd.f32 %v2667_v36, %v1185_v21  ;;  %v1242_v24 = vsel %vm874_vm3, %v1238_v23, 0.0 }
 0x38a   : > { %1193 = vrot.lane.b32.xlu1 %v1189_v22, %s2326_s2  ;;  %s1545_s2 = scalar_lea.hbm %s2911_s18, %s2758_s23 }
 0x3a2   : > { %1243 = vadd.xlane.f32.xlu0 %v1242_v24 }
 0x3b4   : > { %1240 = vadd.xlane.f32.xlu1 %v1239_v26 }
 0x3ea   : > { %v1196_v27 = vpop.permute.xlu0 %1195 }
 0x3eb   : > { %1201 = vst.msk [vmem:[#allocation2 + $0x8] sm:$0xff] %vm1199_vm6, %v1196_v27 }
 0x3fc   : > { %v1194_v28 = vpop.permute.xlu1 %1193 }
 0x3fd   : > { %1200 = vst.msk [vmem:[#allocation2] sm:$0xff] %vm1199_vm6, %v1194_v28 }
 0x401   : > { %v1285_v29 = vpop.f32.mrf.mxu2 }
 0x402   : > { %v1286_v30 = vadd.f32 %v1285_v29, %v2674_v44 }
 0x404   : > { %2049 = vtanh.f32 %v1286_v30 }
 0x409   : > { %v1288_v31 = vpop.f32.mrf.mxu2 }
 0x40a   : > { %v2050_v32 = vpop.eup %2049  ;;  %v1289_v33 = vadd.f32 %v1288_v31, %v2677_v47 }
 0x40b   : > { %1895 = vmatmul.msk.f32.vlgmr.msra.gmra.mxu1 %vm874_vm3, %v2050_v32  ;;  %v1293_v42 = vmul.f32 %v2050_v32, %v2653_v20 }
 0x40c   : > { %2051 = vtanh.f32 %v1289_v33 }
 0x40d   : > { %v1295_v43 = vsel %vm874_vm3, %v1293_v42, 0.0 }
 0x412   : > { %v2052_v34 = vpop.eup %2051 }
 0x413   : > { %1896 = vmatmul.msk.f32.gmra.mxu1 %vm874_vm3, %v2052_v34  ;;  %v1294_v35 = vmul.f32 %v2052_v34, %v2653_v20 }
 0x415   : > { %v1298_v37 = vsel %vm874_vm3, %v1294_v35, 0.0  ;;  %v1244_v40 = vpop.xlane.xlu0 %1243 }
 0x416   : > { %1299 = vadd.xlane.f32.xlu1 %v1298_v37  ;;  %v1246_v41 = vadd.f32 %v2667_v36, %v1244_v40 }
 0x427   : > { %v1241_v38 = vpop.xlane.xlu1 %1240 }
 0x428   : > { %v1245_v39 = vadd.f32 %v2667_v36, %v1241_v38 }
 0x42a   : > { %1249 = vrot.lane.b32.xlu2 %v1245_v39, %s2327_s4 }
 0x432   : > { %1251 = vrot.lane.b32.xlu2 %v1246_v41, %s2327_s4  ;;  %s1546_s4 = sshll.u32 %s2605_s0, 4  ;;  %s1547_s4 = int_to_ptr.vmem [resolvable:$true] %s1546_s4 }
 0x45b   : > { %1296 = vadd.xlane.f32.xlu2 %v1295_v43 }
 0x484   : > { %v1250_v45 = vpop.permute.xlu2 %1249 }
 0x485   : > { %1256 = vst.msk [vmem:[#allocation2] sm:$0xff] %vm1255_vm7, %v1250_v45 }
 0x488   : > { %v1341_v46 = vpop.f32.mrf.mxu1 }
 0x489   : > { %v1342_v48 = vadd.f32 %v1341_v46, %v2674_v44  ;;  %v1300_v49 = vpop.xlane.xlu1 %1299 }
 0x48a   : > { %v1302_v50 = vadd.f32 %v2667_v36, %v1300_v49 }
 0x48b   : > { %2053 = vtanh.f32 %v1342_v48 }
 0x48c   : > { %1307 = vrot.lane.b32.xlu1 %v1302_v50, %s2328_s30  ;;  %v1252_v51 = vpop.permute.xlu2 %1251 }
 0x48d   : > { %1257 = vst.msk [vmem:[#allocation2 + $0x8] sm:$0xff] %vm1255_vm7, %v1252_v51 }
 0x490   : > { %v1344_v52 = vpop.f32.mrf.mxu1 }
 0x491   : > { %v2054_v53 = vpop.eup %2053  ;;  %v1345_v56 = vadd.f32 %v1344_v52, %v2677_v47 }
 0x492   : > { %1897 = vmatmul.msk.f32.vlgmr.msra.gmra.mxu3 %vm874_vm3, %v2054_v53  ;;  %v1349_v62 = vmul.f32 %v2054_v53, %v2653_v20 }
 0x493   : > { %2055 = vtanh.f32 %v1345_v56 }
 0x494   : > { %v1351_v63 = vsel %vm874_vm3, %v1349_v62, 0.0 }
 0x499   : > { %v2056_v57 = vpop.eup %2055 }
 0x49a   : > { %1898 = vmatmul.msk.f32.gmra.mxu3 %vm874_vm3, %v2056_v57  ;;  %v1350_v58 = vmul.f32 %v2056_v57, %v2653_v20 }
 0x49c   : > { %v1354_v59 = vsel %vm874_vm3, %v1350_v58, 0.0 }
 0x4b6   : > { %1355 = vadd.xlane.f32.xlu1 %v1354_v59 }
 0x4ce   : > { %v1297_v60 = vpop.xlane.xlu2 %1296 }
 0x4cf   : > { %v1301_v61 = vadd.f32 %v2667_v36, %v1297_v60  ;;  %1490 = vrot.lane.b32.xlu1 %v2600_v54, %s2961_s10 }
 0x4d1   : > { %1305 = vrot.lane.b32.xlu0 %v1301_v61, %s2328_s30  ;;  %s1548_s30 = sshll.u32 %s1545_s2, 4  ;;  %s1549_s30 = int_to_ptr.hbm [resolvable:$true] %s1548_s30 }
 0x4d2   : > { %s2169_s6 = sshra.s32 %s1549_s30, 4  ;;  %s2170_s6 = int_to_ptr.hbm [resolvable:$true] %s2169_s6 }
 0x4d3   : > { %s2171_s7 = scalar_lea.hbm %s2170_s6, 16  ;;  %p2176_p3 = scmp.lt.s32.totalorder %s2170_s6, %s2911_s18 }
 0x4d4   : > { %p2172_p0 = scmp.ne.s32.totalorder %s2170_s6, %s2171_s7  ;;  %p2177_p4 = scmp.lt.s32.totalorder %s2175_s11, %s2171_s7 }
 0x4d6   : > { %p2173_p1 = pnand %p2172_p0, %p2487_p5  ;;  %p2178_p7 = por %p2177_p4, %p2176_p3 }
 0x4d8   : > { %p2174_p2 = pneg %p2173_p1 }
 0x4da   : > { %p2179_p8 = pnand %p2178_p7, %p2174_p2 }
 0x4fb   : > { %1352 = vadd.xlane.f32.xlu0 %v1351_v63 }
 0x4fe   : > { %v1308_v0 = vpop.permute.xlu1 %1307 }
 0x4ff   : > { %1313 = vst.msk [vmem:[#allocation2 + $0x8] sm:$0xff] %vm1311_vm8, %v1308_v0 }
 0x515   : > { %v1397_v1 = vpop.f32.mrf.mxu3 }
 0x516   : > { %v1398_v4 = vadd.f32 %v1397_v1, %v2674_v44 }
 0x518   : > { %2057 = vtanh.f32 %v1398_v4 }
 0x51d   : > { %v1400_v5 = vpop.f32.mrf.mxu3 }
 0x51e   : > { %v2058_v6 = vpop.eup %2057  ;;  %v1401_v7 = vadd.f32 %v1400_v5, %v2677_v47 }
 0x51f   : > { %1899 = vmatmul.msk.f32.vlgmr.msra.gmra.mxu0 %vm874_vm3, %v2058_v6  ;;  %v1405_v12 = vmul.f32 %v2058_v6, %v2653_v20 }
 0x520   : > { %2059 = vtanh.f32 %v1401_v7 }
 0x521   : > { %v1407_v13 = vsel %vm874_vm3, %v1405_v12, 0.0 }
 0x526   : > { %v2060_v54 = vpop.eup %2059 }
 0x527   : > { %1900 = vmatmul.msk.f32.gmra.mxu0 %vm874_vm3, %v2060_v54  ;;  %v1406_v14 = vmul.f32 %v2060_v54, %v2653_v20 }
 0x529   : > { %v1356_v8 = vpop.xlane.xlu1 %1355  ;;  %v1410_v15 = vsel %vm874_vm3, %v1406_v14, 0.0 }
 0x52a   : > { %v1358_v9 = vadd.f32 %v2667_v36, %v1356_v8 }
 0x52c   : > { %1363 = vrot.lane.b32.xlu2 %v1358_v9, %s2329_s12 }
 0x541   : > { %v1491_v10 = vpop.permute.xlu1 %1490 }
 0x542   : > { %1496 = vst.msk [vmem:[%s2735_s26] sm:$0xff] %vm874_vm3, %v1491_v10 }
 0x543   : > { %v1306_v11 = vpop.permute.xlu0 %1305 }
 0x544   : > { %1312 = vst.msk [vmem:[#allocation2] sm:$0xff] %vm1311_vm8, %v1306_v11 }
 0x555   : > { %1408 = vadd.xlane.f32.xlu2 %v1407_v13 }
 0x55d   : > { %1411 = vadd.xlane.f32.xlu2 %v1410_v15 }
 0x56e   : > { %v1353_v16 = vpop.xlane.xlu0 %1352 }
 0x56f   : > { %v1357_v17 = vadd.f32 %v2667_v36, %v1353_v16 }
 0x571   : > { %1361 = vrot.lane.b32.xlu0 %v1357_v17, %s2329_s12  ;;  %s2331_s12 = smov 7  }
 0x586   : > { %v1364_v18 = vpop.permute.xlu2 %1363 }
 0x587   : > { %1369 = vst.msk [vmem:[#allocation2 + $0x8] sm:$0xff] %vm1367_vm9, %v1364_v18 }
 0x59c   : > { %v1453_v19 = vpop.f32.mrf.mxu0 }
 0x59d   : > { %v1454_v21 = vadd.f32 %v1453_v19, %v2674_v44 }
 0x59f   : > { %2061 = vtanh.f32 %v1454_v21 }
 0x5a4   : > { %v1456_v22 = vpop.f32.mrf.mxu0 }
 0x5a5   : > { %v2062_v23 = vpop.eup %2061  ;;  %v1457_v24 = vadd.f32 %v1456_v22, %v2677_v47 }
 0x5a6   : > { %v1461_v25 = vmul.f32 %v2062_v23, %v2653_v20 }
 0x5a7   : > { %2063 = vtanh.f32 %v1457_v24 }
 0x5a8   : > { %v1463_v26 = vsel %vm874_vm3, %v1461_v25, 0.0 }
 0x5a9   : > { %1464 = vadd.xlane.f32.xlu2 %v1463_v26 }
 0x5ad   : > { %v2064_v27 = vpop.eup %2063 }
 0x5ae   : > { %v1462_v28 = vmul.f32 %v2064_v27, %v2653_v20 }
 0x5b0   : > { %v1466_v29 = vsel %vm874_vm3, %v1462_v28, 0.0 }
 0x5b1   : > { %1467 = vadd.xlane.f32.xlu2 %v1466_v29 }
 0x5c8   : > { %v1409_v44 = vpop.xlane.xlu2 %1408 }
 0x5c9   : > { %v1413_v30 = vadd.f32 %v2667_v36, %v1409_v44 }
 0x5cb   : > { %1417 = vrot.lane.b32.xlu1 %v1413_v30, %s2330_s3 }
 0x5d0   : > { %v1412_v47 = vpop.xlane.xlu2 %1411 }
 0x5d1   : > { %v1414_v31 = vadd.f32 %v2667_v36, %v1412_v47 }
 0x5d3   : > { %1504 = vrot.lane.b32.xlu1 %v2620_v3, %s2961_s10  ;;  %1419 = vrot.lane.b32.xlu0 %v1414_v31, %s2330_s3  ;;  %s1516_s3 = scalar_lea.sflag [#allocation6], %s2591_s28 }
 0x5e3   : > { %v1362_v32 = vpop.permute.xlu0 %1361 }
 0x5e4   : > { %1368 = vst.msk [vmem:[#allocation2] sm:$0xff] %vm1367_vm9, %v1362_v32 }
 0x61c   : > { %v1465_v20 = vpop.xlane.xlu2 %1464 }
 0x61d   : > { %v1469_v33 = vadd.f32 %v2667_v36, %v1465_v20 }
 0x61f   : > { %1473 = vrot.lane.b32.xlu0 %v1469_v33, %s2331_s12 }
 0x620   : > { %2182 = shalt.err (!%p2179_p8)
}
 0x621   : > { %s2332_s0 = smov 128   ;;  %s2333_s2 = smov 8   ;;  %vm1423_vm10 = vcmask 56368   ;;  %vm1479_vm11 = vcmask 64568  }
 0x622   : > { %1937 = dma.vmem_to_hbm [thread:$0]  (%p2487_p5), %s1547_s4, 256, %s1549_s30, %s1516_s3, %s2332_s0, %s2332_s0, %s2333_s2  }
 0x623   : > { %s781_s6 = scalar_lea.vmem [#allocation14], %s2598_s29  ;;  %s1596_s9 = scalar_lea.hbm %s2914_s21, %s2758_s23 }
 0x624   : > { %v1468_v3 = vpop.xlane.xlu2 %1467  ;;  %s1597_s11 = sshll.u32 %s781_s6, 4  ;;  %s1531_s29 = scalar_lea.sflag [#allocation15], %s2591_s28  ;;  %s1598_s11 = int_to_ptr.vmem [resolvable:$true] %s1597_s11 }
 0x625   : > { %v1470_v34 = vadd.f32 %v2667_v36, %v1468_v3  ;;  %s2203_s7 = scalar_lea.hbm %s2914_s21, 32 }
 0x627   : > { %1492 = vrot.lane.b32.xlu0 %v2618_v2, %s2961_s10  ;;  %1475 = vrot.lane.b32.xlu2 %v1470_v34, %s2331_s12  ;;  %s2796_s12 = scalar_lea.vmem %s2910_s17, %s2546_s24 }
 0x62f   : > { %1502 = vrot.lane.b32.xlu2 %v2602_v55, %s2961_s10  ;;  %s1599_s10 = sshll.u32 %s1596_s9, 4  ;;  %s1600_s10 = int_to_ptr.hbm [resolvable:$true] %s1599_s10 }
 0x630   : > { %s2197_s3 = sshra.s32 %s1600_s10, 4  ;;  %s2198_s3 = int_to_ptr.hbm [resolvable:$true] %s2197_s3 }
 0x631   : > { %s2199_s1 = scalar_lea.hbm %s2198_s3, 16  ;;  %p2204_p12 = scmp.lt.s32.totalorder %s2198_s3, %s2914_s21 }
 0x632   : > { %p2200_p9 = scmp.ne.s32.totalorder %s2198_s3, %s2199_s1  ;;  %p2205_p13 = scmp.lt.s32.totalorder %s2203_s7, %s2199_s1 }
 0x634   : > { %p2201_p10 = pnand %p2200_p9, %p2487_p5  ;;  %p2206_p0 = por %p2205_p13, %p2204_p12 }
 0x636   : > { %p2202_p11 = pneg %p2201_p10 }
 0x638   : > { %p2207_p1 = pnand %p2206_p0, %p2202_p11 }
 0x63d   : > { %v1418_v35 = vpop.permute.xlu1 %1417 }
 0x63e   : > { %1424 = vst.msk [vmem:[#allocation2] sm:$0xff] %vm1423_vm10, %v1418_v35 }
 0x645   : > { %v1505_v37 = vpop.permute.xlu1 %1504  ;;  %v1420_v38 = vpop.permute.xlu0 %1419 }
 0x646   : > { %1509 = vst.msk [vmem:[%s781_s6 + $0x8] sm:$0xff] %vm874_vm3, %v1505_v37 }
 0x647   : > { %1425 = vst.msk [vmem:[#allocation2 + $0x8] sm:$0xff] %vm1423_vm10, %v1420_v38 }
 0x681   : > { %v1476_v36 = vpop.permute.xlu2 %1475 }
 0x682   : > { %1481 = vst.msk [vmem:[#allocation2 + $0x8] sm:$0xff] %vm1479_vm11, %v1476_v36 }
 0x689   : > { %v1483_v55 = vld [vmem:[#allocation2 + $0x8] sm:$0xff]  ;;  %v1503_v2 = vpop.permute.xlu2 %1502 }
 0x68a   : > { %1485 = vst.msk [vmem:[%s2796_s12 + $0x8] sm:$0xff] %vm816_vm0, %v1483_v55 }
 0x68b   : > { %1508 = vst.msk [vmem:[%s781_s6] sm:$0xff] %vm874_vm3, %v1503_v2 }
 0x68c   : > { %2210 = shalt.err (!%p2207_p1)
}
 0x68d   : > { %1940 = dma.vmem_to_hbm [thread:$0]  (%p2487_p5), %s1598_s11, 256, %s1600_s10, %s1531_s29, %s2332_s0, %s2332_s0, %s2333_s2  }
 0x68e   : > { %s1562_s4 = scalar_lea.hbm %s2912_s19, %s2758_s23  ;;  %s1579_s1 = scalar_lea.hbm %s2913_s20, %s2758_s23 }
 0x68f   : > { %s1563_s25 = sshll.u32 %s2735_s26, 4  ;;  %s1520_s24 = sand.u32 1, %s2468_s16   ;;  %s1564_s25 = int_to_ptr.vmem [resolvable:$true] %s1563_s25 }
 0x690   : > { %s2826_s7 = sshll.u32 %s1562_s4, 4  ;;  %s1580_s8 = sshll.u32 %s2613_s5, 4  ;;  %s1566_s7 = int_to_ptr.hbm [resolvable:$true] %s2826_s7  ;;  %s2832_s8 = int_to_ptr.vmem [resolvable:$true] %s1580_s8 }
 0x691   : > { %v1474_v39 = vpop.permute.xlu0 %1473  ;;  %s2829_s11 = sshll.u32 %s1579_s1, 4  ;;  %s2839_s16 = scalar_lea.sflag [#allocation12], %s1520_s24  ;;  %s1583_s11 = int_to_ptr.hbm [resolvable:$true] %s2829_s11 }
 0x692   : > { %1480 = vst.msk [vmem:[#allocation2] sm:$0xff] %vm1479_vm11, %v1474_v39  ;;  %s2225_s23 = sshra.s32 %s1566_s7, 4  ;;  %s2231_s9 = scalar_lea.hbm %s2912_s19, 32  ;;  %s2226_s23 = int_to_ptr.hbm [resolvable:$true] %s2225_s23 }
 0x693   : > { %s2227_s10 = scalar_lea.hbm %s2226_s23, 16  ;;  %p2232_p7 = scmp.lt.s32.totalorder %s2226_s23, %s2912_s19 }
 0x694   : > { %p2228_p2 = scmp.ne.s32.totalorder %s2226_s23, %s2227_s10  ;;  %p2233_p8 = scmp.lt.s32.totalorder %s2231_s9, %s2227_s10 }
 0x696   : > { %p2229_p3 = pnand %p2228_p2, %p2487_p5  ;;  %p2234_p9 = por %p2233_p8, %p2232_p7 }
 0x698   : > { %p2230_p4 = pneg %p2229_p3 }
 0x699   : > { %v1482_v40 = vld [vmem:[#allocation2] sm:$0xff]  ;;  %v1493_v41 = vpop.permute.xlu0 %1492 }
 0x69a   : > { %1484 = vst.msk [vmem:[%s2796_s12] sm:$0xff] %vm816_vm0, %v1482_v40  ;;  %p2235_p10 = pnand %p2234_p9, %p2230_p4 }
 0x69b   : > { %1497 = vst.msk [vmem:[%s2735_s26 + $0x8] sm:$0xff] %vm874_vm3, %v1493_v41 }
 0x69c   : > { %2238 = shalt.err (!%p2235_p10)
}
 0x69d   : > { %1938 = dma.vmem_to_hbm [thread:$0]  (%p2487_p5), %s1564_s25, 256, %s1566_s7, %s2839_s16, %s2332_s0, %s2332_s0, %s2333_s2  }
 0x69e   : > { %s2253_s26 = sshra.s32 %s1583_s11, 4  ;;  %s2259_s3 = scalar_lea.hbm %s2913_s20, 32  ;;  %s2254_s26 = int_to_ptr.hbm [resolvable:$true] %s2253_s26 }
 0x69f   : > { %s2255_s12 = scalar_lea.hbm %s2254_s26, 16  ;;  %p2260_p0 = scmp.lt.s32.totalorder %s2254_s26, %s2913_s20 }
 0x6a0   : > { %p2256_p11 = scmp.ne.s32.totalorder %s2254_s26, %s2255_s12  ;;  %p2261_p1 = scmp.lt.s32.totalorder %s2259_s3, %s2255_s12 }
 0x6a2   : > { %p2257_p12 = pnand %p2256_p11, %p2487_p5  ;;  %p2262_p2 = por %p2261_p1, %p2260_p0 }
 0x6a4   : > { %p2258_p13 = pneg %p2257_p12 }
 0x6a6   : > { %p2263_p3 = pnand %p2262_p2, %p2258_p13 }
 0x6a8   : > { %2266 = shalt.err (!%p2263_p3)
}
 0x6a9   : > { %1939 = dma.vmem_to_hbm [thread:$0]  (%p2487_p5), %s2832_s8, 256, %s1583_s11, %s2839_s16, %s2332_s0, %s2332_s0, %s2333_s2  }
 0x6aa PF: > { %s2962_s25 = sld [smem:[#allocation23_spill]] }
 0x6ab   : > { %s2963_s7 = sld [smem:[#allocation21_spill]] }
 0x6b0   : > { %p1974_p4 = scmp.ge.s32.totalorder %s2962_s25, 2 }
 0x6b1   : > { %s1622_s10 = sand.u32 1, %s2963_s7  }
 0x6b2   : > { %p1956_p7 = pnand %p1974_p4, %p2491_p6  ;;  %s1623_s5 = scalar_lea.sflag [#allocation6], %s1622_s10 }
 0x6b4   : > { %p1957_p8 = pneg %p1956_p7 }
 0x6b6   : > { %2292 = dma.done.wait (%p1957_p8), %s1623_s5, 256  }
 0x6b7   : > { %2294 = vsyncadd (%p1957_p8), %s1623_s5, 4294967040  ;;  %s2965_s22 = sadd.s32 4294967294, %s2962_s25  }
 0x6b8   : > { %s1632_s29 = sand.u32 1, %s2965_s22  }
 0x6b9   : > { %s1633_s9 = scalar_lea.sflag [#allocation12], %s1632_s29 }
 0x6ba   : > { %2296 = dma.done.wait (%p1957_p8), %s1633_s9, 512  }
 0x6bb   : > { %2298 = vsyncadd (%p1957_p8), %s1633_s9, 4294966784  ;;  %s1653_s28 = scalar_lea.sflag [#allocation15], %s1622_s10 }
 0x6bc   : > { %2300 = dma.done.wait (%p1957_p8), %s1653_s28, 256  }
 0x6bd   : > { %2302 = vsyncadd (%p1957_p8), %s1653_s28, 4294967040  ;;  %s2966_s28 = sld [smem:[#allocation24_spill]]  ;;  %s2969_s26 = smov %s2309_s27 }
 0x6be   : > { %s2967_s0 = sld [smem:[#allocation22_spill]] }
 0x6bf   : > { %s2968_s3 = sld [smem:[#allocation25_spill]] }
 0x6c3   : > { %p42_p5 = scmp.ge.s32.totalorder %s2966_s28, 4  }
 0x6c4   : > { %s2970_s27 = smov %s2967_s0 }
 0x6c5   :  { %44 = sbr.rel (!%p42_p5) target bundleno = 23 (0x17), region = 206 }
 0x6ca   :  { %1659 = vsyncpa [#allocation5], 1 }
 0x6cb   :  { %1661 = vsyncpa [#allocation5 + $0x1], 1 }
 0x6cc   :  { %1662 = vsyncpa [#allocation8], 1 }
 0x6cd   :  { %1663 = vsyncpa [#allocation6], 1 }
 0x6ce   :  { %1665 = vsyncpa [#allocation6 + $0x1], 1 }
 0x6cf   :  { %1666 = vsyncpa [#allocation12], 1 }
 0x6d0   :  { %1668 = vsyncpa [#allocation12 + $0x1], 1 }
 0x6d1   :  { %1669 = vsyncpa [#allocation15], 1 }
 0x6d2   :  { %1671 = vsyncpa [#allocation15 + $0x1], 1 }

</bundles_post_ra>
